<compile_context>
chip_gen: v7x
topology: tpu7x:2x2x1
jax: 0.10.0
libtpu: 0.0.40
codegen_flags: <defaults>
</compile_context>

<pallas_src>
import functools

import jax
import jax.numpy as jnp
from jax.experimental import pallas as pl
from jax.experimental.pallas import tpu as pltpu

LN_EPS = 1e-5                       # PyTorch nn.LayerNorm default
_KRON_WEIGHT_BYTES_CAP = 8 << 20    # cap on block-diagonal (kron) weight expansion
_STEP_BYTES_TARGET = 2 << 20        # ~2 MiB of x per grid step
_SINGLE_STEP_BYTES = 1 << 20        # below this, a multi-step grid is pure overhead
_DEFAULT_SCOPED_VMEM = 16 << 20     # conservative (v5e) default scoped-VMEM limit


def _v2a_kernel(x_ref, w1_ref, b1_ref, w2_ref, b2_ref, o_ref, *,
                pack, hidden, matmul_dtype):
    """One batch tile: (Linear -> SiLU -> LN -> Linear') + residual.

    x_ref:  (tr, pack*D)      -- `pack` samples of width D per 128-lane slab row
    w1_ref: (pack*D, pack*H)  -- block-diagonal W1
    b1_ref: (1, pack*H)
    w2_ref: (pack*H, pack*Do) -- block-diagonal (gamma-folded) W2
    b2_ref: (1, pack*Do)      -- (beta/b2-folded) bias
    o_ref:  (tr, pack*Do)
    """
    x = x_ref[...]
    xf = x.astype(jnp.float32)

    lhs = x.astype(matmul_dtype) if matmul_dtype is not None else xf
    h = jnp.dot(lhs, w1_ref[...], preferred_element_type=jnp.float32)
    h = h + b1_ref[...]                                   # (1, pack*H) broadcast

    # SiLU via the single-transcendental tanh form: sigmoid(h) = 0.5*(tanh(h/2)+1).
    # One EUP push per element instead of two (exp + reciprocal), and exact.
    h = h * (0.5 * (jnp.tanh(0.5 * h) + 1.0))

    # Per-sample LayerNorm: each H-wide lane chunk of the slab row is one sample.
    # Single pass (E[h], E[h^2]) in f32.  gamma/beta already folded into W2/b2.
    chunks = []
    for c in range(pack):
        hc = h[:, c * hidden:(c + 1) * hidden]
        m = jnp.mean(hc, axis=-1, keepdims=True)
        ex2 = jnp.mean(hc * hc, axis=-1, keepdims=True)
        var = ex2 - m * m
        chunks.append((hc - m) * jax.lax.rsqrt(var + LN_EPS))
    hn = chunks[0] if pack == 1 else jnp.concatenate(chunks, axis=-1)

    rhs = hn.astype(matmul_dtype) if matmul_dtype is not None else hn
    out = jnp.dot(rhs, w2_ref[...], preferred_element_type=jnp.float32)
    o_ref[...] = (out + b2_ref[...] + xf).astype(o_ref.dtype)  # bias + residual


def _pick_block_rows(num_rows, row_bytes):
    """Slab rows per grid step.

    * Tiny problems (<= ~1 MiB of x total): single grid step -- extra steps are
      pure ~0.35 us step-boundary + DMA overhead.
    * Otherwise aim at ~2 MiB of x per step (tile-size sweeps: 128-wide tiles hit
      ~30% of HBM roofline, 512+-wide tiles 85%+), as a divisor of num_rows and a
      multiple of 8 (f32 sublane tiling).
    * Prefer an even number of grid steps (v7x: 2 TensorCores under "parallel")
      as long as each step still moves >= ~1 MiB of x.
    """
    if num_rows * row_bytes <= _SINGLE_STEP_BYTES:
        return num_rows
    target = max(8, _STEP_BYTES_TARGET // row_bytes)
    divisors = [c for c in range(8, num_rows + 1, 8) if num_rows % c == 0]
    if num_rows not in divisors:
        divisors.append(num_rows)
    cands = [c for c in divisors if c <= target]
    if not cands:
        return min(divisors)
    even = [c for c in cands
            if (num_rows // c) % 2 == 0 and c * row_bytes >= _SINGLE_STEP_BYTES]
    return max(even) if even else max(cands)


def v2a_mapper(x, w1, b1, gamma, beta, w2, b2, *,
               block_rows=None, matmul_dtype=None, vmem_limit_bytes=None):
    """Fused V2AMapper forward pass.

    matmul_dtype: set to jnp.bfloat16 to feed both MXU matmuls bf16 operands with f32
    accumulation.  Recommended in production on v5e/v6e/v7x (bf16-native MXU on all
    three generations; halves weight DMA/VMEM); expect ~1e-2-level drift vs the f32
    reference, so the demo below keeps the f32 path.
    """
    B, D = x.shape
    Din, H = w1.shape
    Dout = w2.shape[1]
    assert Din == D
    assert w2.shape[0] == H
    assert Dout == D, "residual add (out += identity) requires output_dim == input_dim"

    b1 = jnp.reshape(b1, (1, H))
    gamma = jnp.reshape(gamma, (1, H))
    beta = jnp.reshape(beta, (1, H))
    b2 = jnp.reshape(b2, (1, Dout))

    # One-time weight transform: fold LayerNorm affine into the second linear.
    #   (hn*gamma + beta) @ W2 + b2 == hn @ (diag(gamma) @ W2) + (beta @ W2 + b2)
    w2f = jnp.reshape(gamma, (H, 1)) * w2
    b2f = beta @ w2 + b2

    w_itemsize = (jnp.dtype(matmul_dtype).itemsize if matmul_dtype is not None
                  else w1.dtype.itemsize)

    # Lane-packing: fold `pack` samples into one 128-lane slab row (lane-dense loads,
    # full-K MXU feed, no masked vst partial stores).  Guard against the pack^2
    # blow-up of the block-diagonal weight expansion.
    pack = 1
    if D < 128 and 128 % D == 0:
        pack = 128 // D
        while pack > 1 and (
                B % pack != 0
                or (pack * D * pack * H + pack * H * pack * Dout) * w_itemsize
                > _KRON_WEIGHT_BYTES_CAP):
            pack //= 2
    # TODO(synk): for D not dividing 128, pad the feature dim to a multiple of 128 instead.

    if pack > 1:
        eye = jnp.eye(pack, dtype=w1.dtype)
        w1_k = jnp.kron(eye, w1)            # (pack*D, pack*H), block-diagonal
        w2_k = jnp.kron(eye, w2f)           # (pack*H, pack*Dout), block-diagonal
        b1_k = jnp.tile(b1, (1, pack))      # (1, pack*H)
        b2_k = jnp.tile(b2f, (1, pack))     # (1, pack*Dout)
    else:
        w1_k, w2_k, b1_k, b2_k = w1, w2f, b1, b2f

    if matmul_dtype is not None:            # bf16 MXU operands
        w1_k = w1_k.astype(matmul_dtype)
        w2_k = w2_k.astype(matmul_dtype)

    R = B // pack
    Dp, Hp, Op = pack * D, pack * H, pack * Dout
    x_slab = x.reshape(R, Dp)               # free row-major reshape

    if block_rows is None:
        block_rows = _pick_block_rows(R, Dp * x.dtype.itemsize)
    assert R % block_rows == 0, "block_rows must divide the number of slab rows"
    assert block_rows == R or block_rows % 8 == 0, \
        "block_rows must be a multiple of 8 (f32 sublane tiling) or the full slab count"
    grid = (R // block_rows,)

    kernel = functools.partial(_v2a_kernel, pack=pack, hidden=H, matmul_dtype=matmul_dtype)

    # VMEM budget: double-buffered x/out tiles + (conservatively double-buffered)
    # weights + ~3 f32 intermediates of the h width.  Only raise the scoped limit when
    # the conservative 16 MiB default would be exceeded; cap at v7x's 64 MiB physical.
    weight_bytes = ((w1_k.size + w2_k.size) * w1_k.dtype.itemsize
                    + (b1_k.size + b2_k.size) * b1_k.dtype.itemsize)
    x_tile_bytes = block_rows * Dp * x.dtype.itemsize
    out_tile_bytes = block_rows * Op * x.dtype.itemsize
    inter_bytes = 3 * block_rows * Hp * 4
    vmem_need = 2 * (x_tile_bytes + out_tile_bytes) + 2 * weight_bytes + inter_bytes
    if vmem_limit_bytes is None and vmem_need > _DEFAULT_SCOPED_VMEM:
        vmem_limit_bytes = min(int(vmem_need * 5 // 4), 64 << 20)

    cp_kwargs = dict(dimension_semantics=("parallel",))
    if vmem_limit_bytes is not None:
        cp_kwargs["vmem_limit_bytes"] = int(vmem_limit_bytes)

    cost = pl.CostEstimate(
        flops=int(2 * R * (Dp * Hp + Hp * Op)),
        transcendentals=int(B * H),          # one tanh per hidden element
        bytes_accessed=int(x_slab.size * x_slab.dtype.itemsize
                           + weight_bytes + R * Op * x.dtype.itemsize))

    def _call(single_buffer_weights):
        def wspec(shape):
            if single_buffer_weights:
                # Constant-index weight/bias blocks: single-buffer them to halve
                # resident weight VMEM (matters under v7x's 64 MiB VMEM once D/H grow).
                return pl.BlockSpec(shape, lambda i: (0, 0), pipeline_mode=pl.Buffered(1))
            return pl.BlockSpec(shape, lambda i: (0, 0))

        return pl.pallas_call(
            kernel,
            out_shape=jax.ShapeDtypeStruct((R, Op), x.dtype),
            grid_spec=pltpu.PrefetchScalarGridSpec(
                num_scalar_prefetch=0,
                grid=grid,
                in_specs=[
                    pl.BlockSpec((block_rows, Dp), lambda i: (i, 0)),   # x slab tile
                    wspec((Dp, Hp)),                                    # W1 (block-diag)
                    wspec((1, Hp)),                                     # b1
                    wspec((Hp, Op)),                                    # W2' (gamma-folded)
                    wspec((1, Op)),                                     # b2' (beta-folded)
                ],
                out_specs=pl.BlockSpec((block_rows, Op), lambda i: (i, 0)),
            ),
            compiler_params=pltpu.CompilerParams(**cp_kwargs),
            cost_estimate=cost,
        )(x_slab, w1_k, b1_k, w2_k, b2_k)

    try:
        out_slab = _call(single_buffer_weights=True)
    except Exception:
        # Pallas version without pipeline_mode=pl.Buffered(1) support: fall back to
        # default double-buffered weights (correctness unaffected).
        out_slab = _call(single_buffer_weights=False)

    return out_slab.reshape(B, Dout)


def reference(x, w1, b1, gamma, beta, w2, b2):
    h = x @ w1 + b1
    h = h * jax.nn.sigmoid(h)
    mean = jnp.mean(h, axis=-1, keepdims=True)
    var = jnp.mean((h - mean) ** 2, axis=-1, keepdims=True)
    h = (h - mean) * jax.lax.rsqrt(var + LN_EPS)
    h = h * gamma + beta
    return h @ w2 + b2 + x


if __name__ == "__main__":
    # Shapes consistent with the module: input_dim = output_dim = 32, expansion_rate = 4
    # -> hidden = 128.  batch = 64: pack = 4 samples/slab row -> 16 slab rows -> the
    # problem is tiny (8 KB of x) so the heuristic now picks grid=(1,) (no wasted step).
    input_dim = 32
    output_dim = 32            # residual add requires output_dim == input_dim
    expansion_rate = 4
    hidden = input_dim * expansion_rate
    batch = 64

    key = jax.random.PRNGKey(0)
    kx, k1, kb1, k2, kb2 = jax.random.split(key, 5)

    x = jax.random.normal(kx, (batch, input_dim), dtype=jnp.float32)
    w1 = jax.random.normal(k1, (input_dim, hidden), dtype=jnp.float32) * 0.05
    b1 = jax.random.normal(kb1, (hidden,), dtype=jnp.float32) * 0.01
    gamma = jnp.ones((hidden,), dtype=jnp.float32)     # LayerNorm weight default
    beta = jnp.zeros((hidden,), dtype=jnp.float32)     # LayerNorm bias default
    w2 = jax.random.normal(k2, (hidden, output_dim), dtype=jnp.float32) * 0.05
    b2 = jax.random.normal(kb2, (output_dim,), dtype=jnp.float32) * 0.01

    out = v2a_mapper(x, w1, b1, gamma, beta, w2, b2)   # f32 demo; pass matmul_dtype=jnp.bfloat16 in prod
    out = jax.block_until_ready(out)

    ref = reference(x, w1, b1, gamma, beta, w2, b2)
    assert out.shape == (batch, output_dim)
    # The sigmoid is exact now (tanh form); remaining slack covers differences in MXU
    # f32 pass count between the Pallas dot and the XLA reference matmuls.
    assert jnp.allclose(out, ref, atol=5e-3, rtol=5e-3), "mismatch vs JAX reference"

    print("KERNEL_OK")
</pallas_src>

<mosaic_0001>
module attributes {stable_mosaic.version = 11 : i64} {
  func.func @_v2a_kernel(%arg0: i32, %arg1: memref<16x128xf32, #tpu.memory_space<vmem>>, %arg2: memref<128x512xf32, #tpu.memory_space<vmem>>, %arg3: memref<1x512xf32, #tpu.memory_space<vmem>>, %arg4: memref<512x128xf32, #tpu.memory_space<vmem>>, %arg5: memref<1x128xf32, #tpu.memory_space<vmem>>, %arg6: memref<16x128xf32, #tpu.memory_space<vmem>>) attributes {dimension_semantics = [#tpu.dimension_semantics<parallel>], iteration_bounds = array<i64: 1>, scalar_prefetch = 0 : i64, scratch_operands = 0 : i64, tpu.core_type = #tpu.core_type<tc>, window_params = [{transform_indices = @transform_0, window_bounds = array<i64: 16, 128>}, {pipeline_mode = #tpu.pipeline_mode<synchronous>, transform_indices = @transform_1, window_bounds = array<i64: 128, 512>}, {pipeline_mode = #tpu.pipeline_mode<synchronous>, transform_indices = @transform_2, window_bounds = array<i64: 1, 512>}, {pipeline_mode = #tpu.pipeline_mode<synchronous>, transform_indices = @transform_3, window_bounds = array<i64: 512, 128>}, {pipeline_mode = #tpu.pipeline_mode<synchronous>, transform_indices = @transform_4, window_bounds = array<i64: 1, 128>}, {transform_indices = @transform_5, window_bounds = array<i64: 16, 128>}]} {
    %c0 = arith.constant 0 : index
    %c0_0 = arith.constant 0 : index
    %0 = vector.load %arg1[%c0, %c0_0] : memref<16x128xf32, #tpu.memory_space<vmem>>, vector<16x128xf32>
    %c0_1 = arith.constant 0 : index
    %c0_2 = arith.constant 0 : index
    %1 = vector.load %arg2[%c0_1, %c0_2] : memref<128x512xf32, #tpu.memory_space<vmem>>, vector<128x512xf32>
    %cst = arith.constant dense<0.000000e+00> : vector<16x512xf32>
    %2 = tpu.matmul %0, %1, %cst {dimension_numbers = #tpu.dot_dimension_numbers<[1], [0], [0], [1], [0, 0, 1, 1], [], []>} : vector<16x128xf32>, vector<128x512xf32>, vector<16x512xf32> -> vector<16x512xf32>
    %c0_3 = arith.constant 0 : index
    %c0_4 = arith.constant 0 : index
    %3 = vector.load %arg3[%c0_3, %c0_4] : memref<1x512xf32, #tpu.memory_space<vmem>>, vector<1x512xf32>
    %4 = vector.broadcast %3 : vector<1x512xf32> to vector<16x512xf32>
    %5 = arith.addf %2, %4 : vector<16x512xf32>
    %cst_5 = arith.constant 5.000000e-01 : f32
    %6 = vector.broadcast %cst_5 : f32 to vector<16x512xf32>
    %7 = arith.mulf %6, %5 : vector<16x512xf32>
    %8 = math.tanh %7 : vector<16x512xf32>
    %cst_6 = arith.constant 1.000000e+00 : f32
    %9 = vector.broadcast %cst_6 : f32 to vector<16x512xf32>
    %10 = arith.addf %8, %9 : vector<16x512xf32>
    %cst_7 = arith.constant 5.000000e-01 : f32
    %11 = vector.broadcast %cst_7 : f32 to vector<16x512xf32>
    %12 = arith.mulf %11, %10 : vector<16x512xf32>
    %13 = arith.mulf %5, %12 : vector<16x512xf32>
    %14 = vector.extract_strided_slice %13 {offsets = [0, 0], sizes = [16, 128], strides = [1, 1]} : vector<16x512xf32> to vector<16x128xf32>
    %cst_8 = arith.constant dense<0.000000e+00> : vector<16xf32>
    %15 = vector.multi_reduction <add>, %14, %cst_8 [1] : vector<16x128xf32> to vector<16xf32>
    %16 = vector.shape_cast %15 : vector<16xf32> to vector<16x1xf32>
    %cst_9 = arith.constant 1.280000e+02 : f32
    %17 = vector.broadcast %cst_9 : f32 to vector<16x1xf32>
    %18 = arith.divf %16, %17 : vector<16x1xf32>
    %19 = arith.mulf %14, %14 : vector<16x128xf32>
    %cst_10 = arith.constant dense<0.000000e+00> : vector<16xf32>
    %20 = vector.multi_reduction <add>, %19, %cst_10 [1] : vector<16x128xf32> to vector<16xf32>
    %21 = vector.shape_cast %20 : vector<16xf32> to vector<16x1xf32>
    %cst_11 = arith.constant 1.280000e+02 : f32
    %22 = vector.broadcast %cst_11 : f32 to vector<16x1xf32>
    %23 = arith.divf %21, %22 : vector<16x1xf32>
    %24 = arith.mulf %18, %18 : vector<16x1xf32>
    %25 = arith.subf %23, %24 : vector<16x1xf32>
    %26 = vector.broadcast %18 : vector<16x1xf32> to vector<16x128xf32>
    %27 = arith.subf %14, %26 : vector<16x128xf32>
    %cst_12 = arith.constant 9.99999974E-6 : f32
    %28 = vector.broadcast %cst_12 : f32 to vector<16x1xf32>
    %29 = arith.addf %25, %28 : vector<16x1xf32>
    %30 = math.rsqrt %29 : vector<16x1xf32>
    %31 = vector.broadcast %30 : vector<16x1xf32> to vector<16x128xf32>
    %32 = arith.mulf %27, %31 : vector<16x128xf32>
    %33 = vector.extract_strided_slice %13 {offsets = [0, 128], sizes = [16, 128], strides = [1, 1]} : vector<16x512xf32> to vector<16x128xf32>
    %cst_13 = arith.constant dense<0.000000e+00> : vector<16xf32>
    %34 = vector.multi_reduction <add>, %33, %cst_13 [1] : vector<16x128xf32> to vector<16xf32>
    %35 = vector.shape_cast %34 : vector<16xf32> to vector<16x1xf32>
    %cst_14 = arith.constant 1.280000e+02 : f32
    %36 = vector.broadcast %cst_14 : f32 to vector<16x1xf32>
    %37 = arith.divf %35, %36 : vector<16x1xf32>
    %38 = arith.mulf %33, %33 : vector<16x128xf32>
    %cst_15 = arith.constant dense<0.000000e+00> : vector<16xf32>
    %39 = vector.multi_reduction <add>, %38, %cst_15 [1] : vector<16x128xf32> to vector<16xf32>
    %40 = vector.shape_cast %39 : vector<16xf32> to vector<16x1xf32>
    %cst_16 = arith.constant 1.280000e+02 : f32
    %41 = vector.broadcast %cst_16 : f32 to vector<16x1xf32>
    %42 = arith.divf %40, %41 : vector<16x1xf32>
    %43 = arith.mulf %37, %37 : vector<16x1xf32>
    %44 = arith.subf %42, %43 : vector<16x1xf32>
    %45 = vector.broadcast %37 : vector<16x1xf32> to vector<16x128xf32>
    %46 = arith.subf %33, %45 : vector<16x128xf32>
    %cst_17 = arith.constant 9.99999974E-6 : f32
    %47 = vector.broadcast %cst_17 : f32 to vector<16x1xf32>
    %48 = arith.addf %44, %47 : vector<16x1xf32>
    %49 = math.rsqrt %48 : vector<16x1xf32>
    %50 = vector.broadcast %49 : vector<16x1xf32> to vector<16x128xf32>
    %51 = arith.mulf %46, %50 : vector<16x128xf32>
    %52 = vector.extract_strided_slice %13 {offsets = [0, 256], sizes = [16, 128], strides = [1, 1]} : vector<16x512xf32> to vector<16x128xf32>
    %cst_18 = arith.constant dense<0.000000e+00> : vector<16xf32>
    %53 = vector.multi_reduction <add>, %52, %cst_18 [1] : vector<16x128xf32> to vector<16xf32>
    %54 = vector.shape_cast %53 : vector<16xf32> to vector<16x1xf32>
    %cst_19 = arith.constant 1.280000e+02 : f32
    %55 = vector.broadcast %cst_19 : f32 to vector<16x1xf32>
    %56 = arith.divf %54, %55 : vector<16x1xf32>
    %57 = arith.mulf %52, %52 : vector<16x128xf32>
    %cst_20 = arith.constant dense<0.000000e+00> : vector<16xf32>
    %58 = vector.multi_reduction <add>, %57, %cst_20 [1] : vector<16x128xf32> to vector<16xf32>
    %59 = vector.shape_cast %58 : vector<16xf32> to vector<16x1xf32>
    %cst_21 = arith.constant 1.280000e+02 : f32
    %60 = vector.broadcast %cst_21 : f32 to vector<16x1xf32>
    %61 = arith.divf %59, %60 : vector<16x1xf32>
    %62 = arith.mulf %56, %56 : vector<16x1xf32>
    %63 = arith.subf %61, %62 : vector<16x1xf32>
    %64 = vector.broadcast %56 : vector<16x1xf32> to vector<16x128xf32>
    %65 = arith.subf %52, %64 : vector<16x128xf32>
    %cst_22 = arith.constant 9.99999974E-6 : f32
    %66 = vector.broadcast %cst_22 : f32 to vector<16x1xf32>
    %67 = arith.addf %63, %66 : vector<16x1xf32>
    %68 = math.rsqrt %67 : vector<16x1xf32>
    %69 = vector.broadcast %68 : vector<16x1xf32> to vector<16x128xf32>
    %70 = arith.mulf %65, %69 : vector<16x128xf32>
    %71 = vector.extract_strided_slice %13 {offsets = [0, 384], sizes = [16, 128], strides = [1, 1]} : vector<16x512xf32> to vector<16x128xf32>
    %cst_23 = arith.constant dense<0.000000e+00> : vector<16xf32>
    %72 = vector.multi_reduction <add>, %71, %cst_23 [1] : vector<16x128xf32> to vector<16xf32>
    %73 = vector.shape_cast %72 : vector<16xf32> to vector<16x1xf32>
    %cst_24 = arith.constant 1.280000e+02 : f32
    %74 = vector.broadcast %cst_24 : f32 to vector<16x1xf32>
    %75 = arith.divf %73, %74 : vector<16x1xf32>
    %76 = arith.mulf %71, %71 : vector<16x128xf32>
    %cst_25 = arith.constant dense<0.000000e+00> : vector<16xf32>
    %77 = vector.multi_reduction <add>, %76, %cst_25 [1] : vector<16x128xf32> to vector<16xf32>
    %78 = vector.shape_cast %77 : vector<16xf32> to vector<16x1xf32>
    %cst_26 = arith.constant 1.280000e+02 : f32
    %79 = vector.broadcast %cst_26 : f32 to vector<16x1xf32>
    %80 = arith.divf %78, %79 : vector<16x1xf32>
    %81 = arith.mulf %75, %75 : vector<16x1xf32>
    %82 = arith.subf %80, %81 : vector<16x1xf32>
    %83 = vector.broadcast %75 : vector<16x1xf32> to vector<16x128xf32>
    %84 = arith.subf %71, %83 : vector<16x128xf32>
    %cst_27 = arith.constant 9.99999974E-6 : f32
    %85 = vector.broadcast %cst_27 : f32 to vector<16x1xf32>
    %86 = arith.addf %82, %85 : vector<16x1xf32>
    %87 = math.rsqrt %86 : vector<16x1xf32>
    %88 = vector.broadcast %87 : vector<16x1xf32> to vector<16x128xf32>
    %89 = arith.mulf %84, %88 : vector<16x128xf32>
    %90 = tpu.concatenate %32, %51, %70, %89 in 1 : vector<16x128xf32>, vector<16x128xf32>, vector<16x128xf32>, vector<16x128xf32> -> vector<16x512xf32>
    %c0_28 = arith.constant 0 : index
    %c0_29 = arith.constant 0 : index
    %91 = vector.load %arg4[%c0_28, %c0_29] : memref<512x128xf32, #tpu.memory_space<vmem>>, vector<512x128xf32>
    %cst_30 = arith.constant dense<0.000000e+00> : vector<16x128xf32>
    %92 = tpu.matmul %90, %91, %cst_30 {dimension_numbers = #tpu.dot_dimension_numbers<[1], [0], [0], [1], [0, 0, 1, 1], [], []>} : vector<16x512xf32>, vector<512x128xf32>, vector<16x128xf32> -> vector<16x128xf32>
    %c0_31 = arith.constant 0 : index
    %c0_32 = arith.constant 0 : index
    %93 = vector.load %arg5[%c0_31, %c0_32] : memref<1x128xf32, #tpu.memory_space<vmem>>, vector<1x128xf32>
    %94 = vector.broadcast %93 : vector<1x128xf32> to vector<16x128xf32>
    %95 = arith.addf %92, %94 : vector<16x128xf32>
    %96 = arith.addf %95, %0 : vector<16x128xf32>
    %c0_33 = arith.constant 0 : index
    %c0_34 = arith.constant 0 : index
    %97 = vector.load %arg6[%c0_33, %c0_34] : memref<16x128xf32, #tpu.memory_space<vmem>>, vector<16x128xf32>
    tpu.vector_store %arg6[%c0_33, %c0_34], %96 {strides = array<i32>} : memref<16x128xf32, #tpu.memory_space<vmem>>, vector<16x128xf32>,
    return
  }
  func.func @transform_0(%arg0: i32) -> (i32, i32) {
    %c0_i32 = arith.constant 0 : i32
    %c0_i32_0 = arith.constant 0 : i32
    return %arg0, %c0_i32 : i32, i32
  }
  func.func @transform_1(%arg0: i32) -> (i32, i32) {
    %c0_i32 = arith.constant 0 : i32
    %c0_i32_0 = arith.constant 0 : i32
    %c0_i32_1 = arith.constant 0 : i32
    return %c0_i32, %c0_i32_0 : i32, i32
  }
  func.func @transform_2(%arg0: i32) -> (i32, i32) {
    %c0_i32 = arith.constant 0 : i32
    %c0_i32_0 = arith.constant 0 : i32
    %c0_i32_1 = arith.constant 0 : i32
    return %c0_i32, %c0_i32_0 : i32, i32
  }
  func.func @transform_3(%arg0: i32) -> (i32, i32) {
    %c0_i32 = arith.constant 0 : i32
    %c0_i32_0 = arith.constant 0 : i32
    %c0_i32_1 = arith.constant 0 : i32
    return %c0_i32, %c0_i32_0 : i32, i32
  }
  func.func @transform_4(%arg0: i32) -> (i32, i32) {
    %c0_i32 = arith.constant 0 : i32
    %c0_i32_0 = arith.constant 0 : i32
    %c0_i32_1 = arith.constant 0 : i32
    return %c0_i32, %c0_i32_0 : i32, i32
  }
  func.func @transform_5(%arg0: i32) -> (i32, i32) {
    %c0_i32 = arith.constant 0 : i32
    %c0_i32_0 = arith.constant 0 : i32
    return %arg0, %c0_i32 : i32, i32
  }
}

module attributes {stable_mosaic.version = 11 : i64} {
  func.func @_v2a_kernel(%arg0: i32, %arg1: memref<16x128xf32, #tpu.memory_space<vmem>>, %arg2: memref<128x512xf32, #tpu.memory_space<vmem>>, %arg3: memref<1x512xf32, #tpu.memory_space<vmem>>, %arg4: memref<512x128xf32, #tpu.memory_space<vmem>>, %arg5: memref<1x128xf32, #tpu.memory_space<vmem>>, %arg6: memref<16x128xf32, #tpu.memory_space<vmem>>) attributes {dimension_semantics = [#tpu.dimension_semantics<parallel>], iteration_bounds = array<i64: 1>, scalar_prefetch = 0 : i64, scratch_operands = 0 : i64, tpu.core_type = #tpu.core_type<tc>, window_params = [{transform_indices = @transform_0, window_bounds = array<i64: 16, 128>}, {pipeline_mode = #tpu.pipeline_mode<synchronous>, transform_indices = @transform_1, window_bounds = array<i64: 128, 512>}, {pipeline_mode = #tpu.pipeline_mode<synchronous>, transform_indices = @transform_2, window_bounds = array<i64: 1, 512>}, {pipeline_mode = #tpu.pipeline_mode<synchronous>, transform_indices = @transform_3, window_bounds = array<i64: 512, 128>}, {pipeline_mode = #tpu.pipeline_mode<synchronous>, transform_indices = @transform_4, window_bounds = array<i64: 1, 128>}, {transform_indices = @transform_5, window_bounds = array<i64: 16, 128>}]} {
    %c0 = arith.constant 0 : index
    %c0_0 = arith.constant 0 : index
    %0 = vector.load %arg1[%c0, %c0_0] : memref<16x128xf32, #tpu.memory_space<vmem>>, vector<16x128xf32>
    %c0_1 = arith.constant 0 : index
    %c0_2 = arith.constant 0 : index
    %1 = vector.load %arg2[%c0_1, %c0_2] : memref<128x512xf32, #tpu.memory_space<vmem>>, vector<128x512xf32>
    %cst = arith.constant dense<0.000000e+00> : vector<16x512xf32>
    %2 = tpu.matmul %0, %1, %cst {dimension_numbers = #tpu.dot_dimension_numbers<[1], [0], [0], [1], [0, 0, 1, 1], [], []>} : vector<16x128xf32>, vector<128x512xf32>, vector<16x512xf32> -> vector<16x512xf32>
    %c0_3 = arith.constant 0 : index
    %c0_4 = arith.constant 0 : index
    %3 = vector.load %arg3[%c0_3, %c0_4] : memref<1x512xf32, #tpu.memory_space<vmem>>, vector<1x512xf32>
    %4 = vector.broadcast %3 : vector<1x512xf32> to vector<16x512xf32>
    %5 = arith.addf %2, %4 : vector<16x512xf32>
    %cst_5 = arith.constant 5.000000e-01 : f32
    %6 = vector.broadcast %cst_5 : f32 to vector<16x512xf32>
    %7 = arith.mulf %6, %5 : vector<16x512xf32>
    %8 = math.tanh %7 : vector<16x512xf32>
    %cst_6 = arith.constant 1.000000e+00 : f32
    %9 = vector.broadcast %cst_6 : f32 to vector<16x512xf32>
    %10 = arith.addf %8, %9 : vector<16x512xf32>
    %cst_7 = arith.constant 5.000000e-01 : f32
    %11 = vector.broadcast %cst_7 : f32 to vector<16x512xf32>
    %12 = arith.mulf %11, %10 : vector<16x512xf32>
    %13 = arith.mulf %5, %12 : vector<16x512xf32>
    %14 = vector.extract_strided_slice %13 {offsets = [0, 0], sizes = [16, 128], strides = [1, 1]} : vector<16x512xf32> to vector<16x128xf32>
    %cst_8 = arith.constant dense<0.000000e+00> : vector<16xf32>
    %15 = vector.multi_reduction <add>, %14, %cst_8 [1] : vector<16x128xf32> to vector<16xf32>
    %16 = vector.shape_cast %15 : vector<16xf32> to vector<16x1xf32>
    %cst_9 = arith.constant 1.280000e+02 : f32
    %17 = vector.broadcast %cst_9 : f32 to vector<16x1xf32>
    %18 = arith.divf %16, %17 : vector<16x1xf32>
    %19 = arith.mulf %14, %14 : vector<16x128xf32>
    %cst_10 = arith.constant dense<0.000000e+00> : vector<16xf32>
    %20 = vector.multi_reduction <add>, %19, %cst_10 [1] : vector<16x128xf32> to vector<16xf32>
    %21 = vector.shape_cast %20 : vector<16xf32> to vector<16x1xf32>
    %cst_11 = arith.constant 1.280000e+02 : f32
    %22 = vector.broadcast %cst_11 : f32 to vector<16x1xf32>
    %23 = arith.divf %21, %22 : vector<16x1xf32>
    %24 = arith.mulf %18, %18 : vector<16x1xf32>
    %25 = arith.subf %23, %24 : vector<16x1xf32>
    %26 = vector.broadcast %18 : vector<16x1xf32> to vector<16x128xf32>
    %27 = arith.subf %14, %26 : vector<16x128xf32>
    %cst_12 = arith.constant 9.99999974E-6 : f32
    %28 = vector.broadcast %cst_12 : f32 to vector<16x1xf32>
    %29 = arith.addf %25, %28 : vector<16x1xf32>
    %30 = math.rsqrt %29 : vector<16x1xf32>
    %31 = vector.broadcast %30 : vector<16x1xf32> to vector<16x128xf32>
    %32 = arith.mulf %27, %31 : vector<16x128xf32>
    %33 = vector.extract_strided_slice %13 {offsets = [0, 128], sizes = [16, 128], strides = [1, 1]} : vector<16x512xf32> to vector<16x128xf32>
    %cst_13 = arith.constant dense<0.000000e+00> : vector<16xf32>
    %34 = vector.multi_reduction <add>, %33, %cst_13 [1] : vector<16x128xf32> to vector<16xf32>
    %35 = vector.shape_cast %34 : vector<16xf32> to vector<16x1xf32>
    %cst_14 = arith.constant 1.280000e+02 : f32
    %36 = vector.broadcast %cst_14 : f32 to vector<16x1xf32>
    %37 = arith.divf %35, %36 : vector<16x1xf32>
    %38 = arith.mulf %33, %33 : vector<16x128xf32>
    %cst_15 = arith.constant dense<0.000000e+00> : vector<16xf32>
    %39 = vector.multi_reduction <add>, %38, %cst_15 [1] : vector<16x128xf32> to vector<16xf32>
    %40 = vector.shape_cast %39 : vector<16xf32> to vector<16x1xf32>
    %cst_16 = arith.constant 1.280000e+02 : f32
    %41 = vector.broadcast %cst_16 : f32 to vector<16x1xf32>
    %42 = arith.divf %40, %41 : vector<16x1xf32>
    %43 = arith.mulf %37, %37 : vector<16x1xf32>
    %44 = arith.subf %42, %43 : vector<16x1xf32>
    %45 = vector.broadcast %37 : vector<16x1xf32> to vector<16x128xf32>
    %46 = arith.subf %33, %45 : vector<16x128xf32>
    %cst_17 = arith.constant 9.99999974E-6 : f32
    %47 = vector.broadcast %cst_17 : f32 to vector<16x1xf32>
    %48 = arith.addf %44, %47 : vector<16x1xf32>
    %49 = math.rsqrt %48 : vector<16x1xf32>
    %50 = vector.broadcast %49 : vector<16x1xf32> to vector<16x128xf32>
    %51 = arith.mulf %46, %50 : vector<16x128xf32>
    %52 = vector.extract_strided_slice %13 {offsets = [0, 256], sizes = [16, 128], strides = [1, 1]} : vector<16x512xf32> to vector<16x128xf32>
    %cst_18 = arith.constant dense<0.000000e+00> : vector<16xf32>
    %53 = vector.multi_reduction <add>, %52, %cst_18 [1] : vector<16x128xf32> to vector<16xf32>
    %54 = vector.shape_cast %53 : vector<16xf32> to vector<16x1xf32>
    %cst_19 = arith.constant 1.280000e+02 : f32
    %55 = vector.broadcast %cst_19 : f32 to vector<16x1xf32>
    %56 = arith.divf %54, %55 : vector<16x1xf32>
    %57 = arith.mulf %52, %52 : vector<16x128xf32>
    %cst_20 = arith.constant dense<0.000000e+00> : vector<16xf32>
    %58 = vector.multi_reduction <add>, %57, %cst_20 [1] : vector<16x128xf32> to vector<16xf32>
    %59 = vector.shape_cast %58 : vector<16xf32> to vector<16x1xf32>
    %cst_21 = arith.constant 1.280000e+02 : f32
    %60 = vector.broadcast %cst_21 : f32 to vector<16x1xf32>
    %61 = arith.divf %59, %60 : vector<16x1xf32>
    %62 = arith.mulf %56, %56 : vector<16x1xf32>
    %63 = arith.subf %61, %62 : vector<16x1xf32>
    %64 = vector.broadcast %56 : vector<16x1xf32> to vector<16x128xf32>
    %65 = arith.subf %52, %64 : vector<16x128xf32>
    %cst_22 = arith.constant 9.99999974E-6 : f32
    %66 = vector.broadcast %cst_22 : f32 to vector<16x1xf32>
    %67 = arith.addf %63, %66 : vector<16x1xf32>
    %68 = math.rsqrt %67 : vector<16x1xf32>
    %69 = vector.broadcast %68 : vector<16x1xf32> to vector<16x128xf32>
    %70 = arith.mulf %65, %69 : vector<16x128xf32>
    %71 = vector.extract_strided_slice %13 {offsets = [0, 384], sizes = [16, 128], strides = [1, 1]} : vector<16x512xf32> to vector<16x128xf32>
    %cst_23 = arith.constant dense<0.000000e+00> : vector<16xf32>
    %72 = vector.multi_reduction <add>, %71, %cst_23 [1] : vector<16x128xf32> to vector<16xf32>
    %73 = vector.shape_cast %72 : vector<16xf32> to vector<16x1xf32>
    %cst_24 = arith.constant 1.280000e+02 : f32
    %74 = vector.broadcast %cst_24 : f32 to vector<16x1xf32>
    %75 = arith.divf %73, %74 : vector<16x1xf32>
    %76 = arith.mulf %71, %71 : vector<16x128xf32>
    %cst_25 = arith.constant dense<0.000000e+00> : vector<16xf32>
    %77 = vector.multi_reduction <add>, %76, %cst_25 [1] : vector<16x128xf32> to vector<16xf32>
    %78 = vector.shape_cast %77 : vector<16xf32> to vector<16x1xf32>
    %cst_26 = arith.constant 1.280000e+02 : f32
    %79 = vector.broadcast %cst_26 : f32 to vector<16x1xf32>
    %80 = arith.divf %78, %79 : vector<16x1xf32>
    %81 = arith.mulf %75, %75 : vector<16x1xf32>
    %82 = arith.subf %80, %81 : vector<16x1xf32>
    %83 = vector.broadcast %75 : vector<16x1xf32> to vector<16x128xf32>
    %84 = arith.subf %71, %83 : vector<16x128xf32>
    %cst_27 = arith.constant 9.99999974E-6 : f32
    %85 = vector.broadcast %cst_27 : f32 to vector<16x1xf32>
    %86 = arith.addf %82, %85 : vector<16x1xf32>
    %87 = math.rsqrt %86 : vector<16x1xf32>
    %88 = vector.broadcast %87 : vector<16x1xf32> to vector<16x128xf32>
    %89 = arith.mulf %84, %88 : vector<16x128xf32>
    %90 = tpu.concatenate %32, %51, %70, %89 in 1 : vector<16x128xf32>, vector<16x128xf32>, vector<16x128xf32>, vector<16x128xf32> -> vector<16x512xf32>
    %c0_28 = arith.constant 0 : index
    %c0_29 = arith.constant 0 : index
    %91 = vector.load %arg4[%c0_28, %c0_29] : memref<512x128xf32, #tpu.memory_space<vmem>>, vector<512x128xf32>
    %cst_30 = arith.constant dense<0.000000e+00> : vector<16x128xf32>
    %92 = tpu.matmul %90, %91, %cst_30 {dimension_numbers = #tpu.dot_dimension_numbers<[1], [0], [0], [1], [0, 0, 1, 1], [], []>} : vector<16x512xf32>, vector<512x128xf32>, vector<16x128xf32> -> vector<16x128xf32>
    %c0_31 = arith.constant 0 : index
    %c0_32 = arith.constant 0 : index
    %93 = vector.load %arg5[%c0_31, %c0_32] : memref<1x128xf32, #tpu.memory_space<vmem>>, vector<1x128xf32>
    %94 = vector.broadcast %93 : vector<1x128xf32> to vector<16x128xf32>
    %95 = arith.addf %92, %94 : vector<16x128xf32>
    %96 = arith.addf %95, %0 : vector<16x128xf32>
    %c0_33 = arith.constant 0 : index
    %c0_34 = arith.constant 0 : index
    %97 = vector.load %arg6[%c0_33, %c0_34] : memref<16x128xf32, #tpu.memory_space<vmem>>, vector<16x128xf32>
    tpu.vector_store %arg6[%c0_33, %c0_34], %96 {strides = array<i32>} : memref<16x128xf32, #tpu.memory_space<vmem>>, vector<16x128xf32>,
    return
  }
  func.func @transform_0(%arg0: i32) -> (i32, i32) {
    %c0_i32 = arith.constant 0 : i32
    %c0_i32_0 = arith.constant 0 : i32
    return %arg0, %c0_i32 : i32, i32
  }
  func.func @transform_1(%arg0: i32) -> (i32, i32) {
    %c0_i32 = arith.constant 0 : i32
    %c0_i32_0 = arith.constant 0 : i32
    %c0_i32_1 = arith.constant 0 : i32
    return %c0_i32, %c0_i32_0 : i32, i32
  }
  func.func @transform_2(%arg0: i32) -> (i32, i32) {
    %c0_i32 = arith.constant 0 : i32
    %c0_i32_0 = arith.constant 0 : i32
    %c0_i32_1 = arith.constant 0 : i32
    return %c0_i32, %c0_i32_0 : i32, i32
  }
  func.func @transform_3(%arg0: i32) -> (i32, i32) {
    %c0_i32 = arith.constant 0 : i32
    %c0_i32_0 = arith.constant 0 : i32
    %c0_i32_1 = arith.constant 0 : i32
    return %c0_i32, %c0_i32_0 : i32, i32
  }
  func.func @transform_4(%arg0: i32) -> (i32, i32) {
    %c0_i32 = arith.constant 0 : i32
    %c0_i32_0 = arith.constant 0 : i32
    %c0_i32_1 = arith.constant 0 : i32
    return %c0_i32, %c0_i32_0 : i32, i32
  }
  func.func @transform_5(%arg0: i32) -> (i32, i32) {
    %c0_i32 = arith.constant 0 : i32
    %c0_i32_0 = arith.constant 0 : i32
    return %arg0, %c0_i32 : i32, i32
  }
}

</mosaic_0001>

<bundles_post_ra>
// kernel: tpu_custom_call.1
= control target key start
LH: loop header
LB: loop body
LE: loop exit
PB: predicated region body
PF: predicated region fallthrough
CT: control target
= control target key end

     0   :  { %10 = vsyncpa [#allocation3], 0  ;;  %s1219_s0 = inlined_call_operand.hbm [shape: f32[16,128], index: 0, kind: input, shape index: {}]   ;;  %s1220_s1 = inlined_call_operand.hbm [shape: f32[128,512], index: 1, kind: input, shape index: {}]   ;;  %s1221_s2 = inlined_call_operand.vmem [shape: f32[1,512], index: 2, kind: input, shape index: {}]   ;;  %s1222_s3 = inlined_call_operand.hbm [shape: f32[512,128], index: 3, kind: input, shape index: {}]   ;;  %s1223_s4 = inlined_call_operand.vmem [shape: f32[1,128], index: 4, kind: input, shape index: {}]   ;;  %s1224_s5 = inlined_call_operand.hbm [shape: f32[16,128], index: 5, kind: output, shape index: {}]  }
   0x1   :  { %11 = vsyncpa [#allocation6], 0 }
   0x2   :  { %12 = vsyncpa [#allocation4], 0  ;;  %s1032_s18 = smov [#allocation5]   ;;  %s938_s22 = scalar_lea.hbm %s1220_s1, 8192 }
   0x3   :  { %s30_s19 = sshll.u32 %s1032_s18, 4  ;;  %p939_p0 = scmp.ne.s32.totalorder %s1220_s1, %s938_s22  ;;  %s31_s19 = int_to_ptr.vmem [resolvable:$true] %s30_s19 }
   0x4   :  { %p942_p1 = scmp.lt.u32.totalorder %s938_s22, %s1220_s1 }
   0x6   :  { %p944_p2 = pnand %p942_p1, %p939_p0 }
   0x8   :  { %947 = shalt.err (!%p944_p2)
}
   0x9   :  { %s948_s27 = scalar_lea.vmem %s31_s19, 8192  ;;  %p953_p4 = scmp.lt.s32.totalorder %s31_s19, %s31_s19 }
   0xa   :  { %p949_p3 = scmp.ne.s32.totalorder %s31_s19, %s948_s27  ;;  %p954_p5 = scmp.lt.s32.totalorder %s948_s27, %s948_s27 }
   0xc   :  { %p955_p6 = por %p954_p5, %p953_p4 }
   0xe   :  { %p956_p7 = pnand %p955_p6, %p949_p3 }
  0x10   :  { %959 = shalt.err (!%p956_p7)
}
  0x11   :  { %s1033_s28 = smov 512   ;;  %s1034_s29 = smov 32  }
  0x12   :  { %36 = dma.hbm_to_vmem [thread:$0]  %s1220_s1, 8192, %s31_s19, [#allocation6], %s1033_s28, %s1033_s28, %s1034_s29  }
  0x13   :  { %s1035_s7 = smov [#allocation2]   ;;  %s960_s11 = scalar_lea.hbm %s1219_s0, 256 }
  0x14   :  { %s18_s8 = sshll.u32 %s1035_s7, 4  ;;  %p961_p8 = scmp.ne.s32.totalorder %s1219_s0, %s960_s11  ;;  %s19_s8 = int_to_ptr.vmem [resolvable:$true] %s18_s8 }
  0x15   :  { %p964_p9 = scmp.lt.u32.totalorder %s960_s11, %s1219_s0 }
  0x17   :  { %p966_p10 = pnand %p964_p9, %p961_p8 }
  0x19   :  { %969 = shalt.err (!%p966_p10)
}
  0x1a   :  { %s970_s16 = scalar_lea.vmem %s19_s8, 256  ;;  %p975_p12 = scmp.lt.s32.totalorder %s19_s8, %s19_s8 }
  0x1b   :  { %p971_p11 = scmp.ne.s32.totalorder %s19_s8, %s970_s16  ;;  %p976_p13 = scmp.lt.s32.totalorder %s970_s16, %s970_s16 }
  0x1d   :  { %p977_p0 = por %p976_p13, %p975_p12 }
  0x1f   :  { %p978_p1 = pnand %p977_p0, %p971_p11 }
  0x21   :  { %981 = shalt.err (!%p978_p1)
}
  0x22   :  { %s1036_s1 = smov 128   ;;  %s1037_s17 = smov 8  }
  0x23   :  { %24 = dma.hbm_to_vmem [thread:$0]  %s1219_s0, 256, %s19_s8, [#allocation3], %s1036_s1, %s1036_s1, %s1037_s17  }
  0x24   :  { %s1038_s20 = smov [#allocation7]   ;;  %s982_s24 = scalar_lea.hbm %s1222_s3, 8192 }
  0x25   :  { %s44_s21 = sshll.u32 %s1038_s20, 4  ;;  %p983_p2 = scmp.ne.s32.totalorder %s1222_s3, %s982_s24  ;;  %s45_s21 = int_to_ptr.vmem [resolvable:$true] %s44_s21 }
  0x26   :  { %p986_p3 = scmp.lt.u32.totalorder %s982_s24, %s1222_s3 }
  0x28   :  { %p988_p4 = pnand %p986_p3, %p983_p2 }
  0x2a   :  { %991 = shalt.err (!%p988_p4)
}
  0x2b   :  { %s992_s29 = scalar_lea.vmem %s45_s21, 8192  ;;  %p997_p6 = scmp.lt.s32.totalorder %s45_s21, %s45_s21 }
  0x2c   :  { %p993_p5 = scmp.ne.s32.totalorder %s45_s21, %s992_s29  ;;  %p998_p7 = scmp.lt.s32.totalorder %s992_s29, %s992_s29 }
  0x2e   :  { %p999_p8 = por %p998_p7, %p997_p6 }
  0x30   :  { %p1000_p9 = pnand %p999_p8, %p993_p5 }
  0x32   :  { %1003 = shalt.err (!%p1000_p9)
}
  0x33   :  { %50 = dma.hbm_to_vmem [thread:$0]  %s1222_s3, 8192, %s45_s21, [#allocation6], %s1036_s1, %s1036_s1, %s1037_s17  }
  0x34   :  { %1026 = dma.done.wait [#allocation3], 256  }
  0x35   :  { %1027 = vsyncadd [#allocation3], 4294967040 }
  0x36   :  { %1028 = dma.done.wait [#allocation6], 16384  }
  0x37   :  { %1029 = vsyncadd [#allocation6], 4294950912  ;;  %v1039_v0 = vmov 0.0   ;;  %v65_v1 = vld [vmem:[#allocation5 + $0x8] sm:$0xff]  ;;  %v67_v3 = vld [vmem:[#allocation5 + $0x18] sm:$0xff]  ;;  %s1040_s8 = smov [#allocation8]  }
  0x38   :  { %214 = vmatprep.mubr.f32.mxu0 %v1039_v0  ;;  %291 = vmatprep.mubr.f32.mxu1 %v1039_v0  ;;  %v69_v2 = vld [vmem:[#allocation5 + $0x28] sm:$0xff]  ;;  %v71_v5 = vld [vmem:[#allocation5 + $0x38] sm:$0xff]  ;;  %v64_v6 = vld [vmem:[#allocation5] sm:$0xff]  ;;  %s679_s9 = sshll.u32 %s1040_s8, 4  ;;  %s680_s9 = int_to_ptr.vmem [resolvable:$true] %s679_s9 }
  0x39   :  { %v769_v4 = vpack.c.bf16 %v69_v2, %v65_v1  ;;  %v68_v7 = vld [vmem:[#allocation5 + $0x20] sm:$0xff]  ;;  %v801_v8 = vpack.c.bf16 %v71_v5, %v67_v3  ;;  %v66_v10 = vld [vmem:[#allocation5 + $0x10] sm:$0xff]  ;;  %v73_v12 = vld [vmem:[#allocation5 + $0x48] sm:$0xff]  ;;  %p1009_p11 = scmp.lt.s32.totalorder %s680_s9, %s680_s9 }
  0x3a   :  { %v771_v9 = vpack.c.bf16 %v68_v7, %v64_v6  ;;  %v70_v11 = vld [vmem:[#allocation5 + $0x30] sm:$0xff]  ;;  %v77_v14 = vld [vmem:[#allocation5 + $0x68] sm:$0xff]  ;;  %v75_v15 = vld [vmem:[#allocation5 + $0x58] sm:$0xff] }
  0x3b   :  { %770 = vmatprep.subr.bf16.mxu0 %v769_v4  ;;  %v803_v13 = vpack.c.bf16 %v70_v11, %v66_v10  ;;  %v79_v16 = vld [vmem:[#allocation5 + $0x78] sm:$0xff]  ;;  %802 = vmatprep.subr.bf16.mxu1 %v801_v8  ;;  %v773_v17 = vpack.c.bf16 %v77_v14, %v73_v12  ;;  %v72_v19 = vld [vmem:[#allocation5 + $0x40] sm:$0xff]  ;;  %v74_v21 = vld [vmem:[#allocation5 + $0x50] sm:$0xff] }
  0x3c   :  { %772 = vmatpush1.bf16.msra.mxu0 %v771_v9  ;;  %v805_v18 = vpack.c.bf16 %v79_v16, %v75_v15  ;;  %v76_v20 = vld [vmem:[#allocation5 + $0x60] sm:$0xff]  ;;  %v78_v23 = vld [vmem:[#allocation5 + $0x70] sm:$0xff]  ;;  %v81_v24 = vld [vmem:[#allocation5 + $0x88] sm:$0xff] }
  0x3d   :  { %804 = vmatpush1.bf16.msra.mxu1 %v803_v13  ;;  %v775_v22 = vpack.c.bf16 %v76_v20, %v72_v19  ;;  %v85_v25 = vld [vmem:[#allocation5 + $0xa8] sm:$0xff]  ;;  %774 = vmatprep.subr.bf16.mxu0 %v773_v17  ;;  %v807_v26 = vpack.c.bf16 %v78_v23, %v74_v21  ;;  %v83_v28 = vld [vmem:[#allocation5 + $0x98] sm:$0xff]  ;;  %v80_v30 = vld [vmem:[#allocation5 + $0x80] sm:$0xff] }
  0x3e   :  { %806 = vmatprep.subr.bf16.mxu1 %v805_v18  ;;  %v777_v27 = vpack.c.bf16 %v85_v25, %v81_v24  ;;  %v87_v29 = vld [vmem:[#allocation5 + $0xb8] sm:$0xff]  ;;  %v84_v32 = vld [vmem:[#allocation5 + $0xa0] sm:$0xff]  ;;  %v82_v33 = vld [vmem:[#allocation5 + $0x90] sm:$0xff] }
  0x3f   :  { %v809_v31 = vpack.c.bf16 %v87_v29, %v83_v28  ;;  %v86_v34 = vld [vmem:[#allocation5 + $0xb0] sm:$0xff]  ;;  %v779_v35 = vpack.c.bf16 %v84_v32, %v80_v30  ;;  %v89_v36 = vld [vmem:[#allocation5 + $0xc8] sm:$0xff]  ;;  %v91_v38 = vld [vmem:[#allocation5 + $0xd8] sm:$0xff] }
  0x40   :  { %776 = vmatpush1.bf16.msra.mxu0 %v775_v22  ;;  %v93_v37 = vld [vmem:[#allocation5 + $0xe8] sm:$0xff]  ;;  %v811_v39 = vpack.c.bf16 %v86_v34, %v82_v33  ;;  %v95_v41 = vld [vmem:[#allocation5 + $0xf8] sm:$0xff]  ;;  %v88_v42 = vld [vmem:[#allocation5 + $0xc0] sm:$0xff] }
  0x41   :  { %808 = vmatpush1.bf16.msra.mxu1 %v807_v26  ;;  %778 = vmatprep.subr.bf16.mxu0 %v777_v27  ;;  %v781_v40 = vpack.c.bf16 %v93_v37, %v89_v36  ;;  %v92_v43 = vld [vmem:[#allocation5 + $0xe0] sm:$0xff]  ;;  %v813_v44 = vpack.c.bf16 %v95_v41, %v91_v38  ;;  %v90_v45 = vld [vmem:[#allocation5 + $0xd0] sm:$0xff]  ;;  %v97_v47 = vld [vmem:[#allocation5 + $0x108] sm:$0xff]  ;;  %v130_v36 = vlaneseq }
  0x42   :  { %810 = vmatprep.subr.bf16.mxu1 %v809_v31  ;;  %v94_v46 = vld [vmem:[#allocation5 + $0xf0] sm:$0xff]  ;;  %v101_v48 = vld [vmem:[#allocation5 + $0x128] sm:$0xff]  ;;  %v99_v49 = vld [vmem:[#allocation5 + $0x118] sm:$0xff]  ;;  %v783_v51 = vpack.c.bf16 %v92_v43, %v88_v42 }
  0x43   :  { %v103_v50 = vld [vmem:[#allocation5 + $0x138] sm:$0xff]  ;;  %v815_v52 = vpack.c.bf16 %v94_v46, %v90_v45  ;;  %v785_v53 = vpack.c.bf16 %v101_v48, %v97_v47  ;;  %v96_v54 = vld [vmem:[#allocation5 + $0x100] sm:$0xff]  ;;  %v98_v56 = vld [vmem:[#allocation5 + $0x110] sm:$0xff]  ;;  %v131_v37 = vshrl.u32 %v130_v36, 7 }
  0x44   :  { %780 = vmatpush1.bf16.msra.mxu0 %v779_v35  ;;  %v100_v55 = vld [vmem:[#allocation5 + $0x120] sm:$0xff]  ;;  %v817_v57 = vpack.c.bf16 %v103_v50, %v99_v49  ;;  %v102_v58 = vld [vmem:[#allocation5 + $0x130] sm:$0xff]  ;;  %v105_v59 = vld [vmem:[#allocation5 + $0x148] sm:$0xff] }
  0x45   :  { %812 = vmatpush1.bf16.msra.mxu1 %v811_v39  ;;  %782 = vmatprep.subr.bf16.mxu0 %v781_v40  ;;  %v109_v60 = vld [vmem:[#allocation5 + $0x168] sm:$0xff]  ;;  %v107_v61 = vld [vmem:[#allocation5 + $0x158] sm:$0xff]  ;;  %v787_v63 = vpack.c.bf16 %v100_v55, %v96_v54  ;;  %v819_v1 = vpack.c.bf16 %v102_v58, %v98_v56  ;;  %v104_v3 = vld [vmem:[#allocation5 + $0x140] sm:$0xff]  ;;  %v132_v38 = vsub.s32 0, %v131_v37  ;;  %v140_v40 = vsub.s32 2, %v131_v37 }
  0x46   :  { %814 = vmatprep.subr.bf16.mxu1 %v813_v44  ;;  %v111_v62 = vld [vmem:[#allocation5 + $0x178] sm:$0xff]  ;;  %v789_v2 = vpack.c.bf16 %v109_v60, %v105_v59  ;;  %v108_v4 = vld [vmem:[#allocation5 + $0x160] sm:$0xff]  ;;  %v106_v5 = vld [vmem:[#allocation5 + $0x150] sm:$0xff]  ;;  %v136_v41 = vsub.s32 1, %v131_v37  ;;  %v144_v42 = vsub.s32 3, %v131_v37 }
  0x47   :  { %v821_v6 = vpack.c.bf16 %v111_v62, %v107_v61  ;;  %v110_v7 = vld [vmem:[#allocation5 + $0x170] sm:$0xff]  ;;  %v113_v8 = vld [vmem:[#allocation5 + $0x188] sm:$0xff]  ;;  %v115_v10 = vld [vmem:[#allocation5 + $0x198] sm:$0xff]  ;;  %v791_v12 = vpack.c.bf16 %v108_v4, %v104_v3 }
  0x48   :  { %784 = vmatpush1.bf16.msra.mxu0 %v783_v51  ;;  %v117_v9 = vld [vmem:[#allocation5 + $0x1a8] sm:$0xff]  ;;  %v119_v11 = vld [vmem:[#allocation5 + $0x1b8] sm:$0xff]  ;;  %v823_v13 = vpack.c.bf16 %v110_v7, %v106_v5  ;;  %v112_v15 = vld [vmem:[#allocation5 + $0x180] sm:$0xff] }
  0x49   :  { %816 = vmatpush1.bf16.msra.mxu1 %v815_v52  ;;  %786 = vmatprep.subr.bf16.mxu0 %v785_v53  ;;  %v793_v14 = vpack.c.bf16 %v117_v9, %v113_v8  ;;  %v116_v16 = vld [vmem:[#allocation5 + $0x1a0] sm:$0xff]  ;;  %v114_v17 = vld [vmem:[#allocation5 + $0x190] sm:$0xff]  ;;  %v825_v18 = vpack.c.bf16 %v119_v11, %v115_v10  ;;  %v121_v20 = vld [vmem:[#allocation5 + $0x1c8] sm:$0xff] }
  0x4a   :  { %818 = vmatprep.subr.bf16.mxu1 %v817_v57  ;;  %v118_v19 = vld [vmem:[#allocation5 + $0x1b0] sm:$0xff]  ;;  %v125_v21 = vld [vmem:[#allocation5 + $0x1e8] sm:$0xff]  ;;  %v123_v22 = vld [vmem:[#allocation5 + $0x1d8] sm:$0xff]  ;;  %v795_v24 = vpack.c.bf16 %v116_v16, %v112_v15 }
  0x4b   :  { %v127_v23 = vld [vmem:[#allocation5 + $0x1f8] sm:$0xff]  ;;  %v827_v25 = vpack.c.bf16 %v118_v19, %v114_v17  ;;  %v797_v26 = vpack.c.bf16 %v125_v21, %v121_v20  ;;  %v120_v27 = vld [vmem:[#allocation5 + $0x1c0] sm:$0xff]  ;;  %v122_v30 = vld [vmem:[#allocation5 + $0x1d0] sm:$0xff] }
  0x4c   :  { %788 = vmatpush1.bf16.msra.mxu0 %v787_v63  ;;  %v124_v28 = vld [vmem:[#allocation5 + $0x1e0] sm:$0xff]  ;;  %v829_v29 = vpack.c.bf16 %v127_v23, %v123_v22  ;;  %v126_v31 = vld [vmem:[#allocation5 + $0x1f0] sm:$0xff]  ;;  %v1120_v35 = vld [vmem:[#allocation2 + $0x8] sm:$0xff] }
  0x4d   :  { %820 = vmatpush1.bf16.msra.mxu1 %v819_v1  ;;  %790 = vmatprep.subr.bf16.mxu0 %v789_v2  ;;  %v799_v32 = vpack.c.bf16 %v124_v28, %v120_v27  ;;  %v831_v33 = vpack.c.bf16 %v126_v31, %v122_v30  ;;  %v1115_v34 = vld [vmem:[#allocation2] sm:$0xff] }
  0x4e   :  { %822 = vmatprep.subr.bf16.mxu1 %v821_v6  ;;  %v128_v39 = vld [vmem:[%s1221_s2] sm:$0xf] }
  0x4f   :  { %v133_v43 = vrot.slane %v128_v39, %v132_v38  ;;  %v141_v44 = vrot.slane %v128_v39, %v140_v40  ;;  %v137_v45 = vrot.slane %v128_v39, %v136_v41  ;;  %v145_v46 = vrot.slane %v128_v39, %v144_v42  ;;  %v465_v38 = vld [vmem:[#allocation7 + $0x80] sm:$0xff]  ;;  %v466_v39 = vld [vmem:[#allocation7 + $0x88] sm:$0xff] }
  0x50   :  { %792 = vmatpush1.bf16.msra.mxu0 %v791_v12  ;;  %v833_v42 = vpack.c.bf16 %v466_v39, %v465_v38  ;;  %v504_v38 = vld [vmem:[#allocation7 + $0x1b8] sm:$0xff]  ;;  %v457_v39 = vld [vmem:[#allocation7 + $0x40] sm:$0xff] }
  0x51   :  { %824 = vmatpush1.bf16.msra.mxu1 %v823_v13  ;;  %794 = vmatprep.subr.bf16.mxu0 %v793_v14 }
  0x52   :  { %826 = vmatprep.subr.bf16.mxu1 %v825_v18 }
  0x54   :  { %796 = vmatpush1.bf16.msra.mxu0 %v795_v24 }
  0x55   :  { %828 = vmatpush1.bf16.msra.mxu1 %v827_v25  ;;  %798 = vmatprep.subr.bf16.mxu0 %v797_v26 }
  0x56   :  { %830 = vmatprep.subr.bf16.mxu1 %v829_v29 }
  0x58   :  { %800 = vmatpush1.bf16.msra.mxu0 %v799_v32 }
  0x59   :  { %832 = vmatpush1.bf16.msra.mxu1 %v831_v33  ;;  %834 = vmatprep.subr.bf16.mxu0 %v833_v42 }
  0x5b   :  { %215 = vmatmul.mubr.f32.vlgmr.msra.gmra.mrb[0].mxu0 %v1115_v34 }
  0x5c   :  { %292 = vmatmul.mubr.f32.vlgmr.msra.gmra.mrb[0].mxu1 %v1115_v34  ;;  %220 = vmatprep.mubr.f32.mxu0 %v1039_v0 }
  0x5d   :  { %297 = vmatprep.mubr.f32.mxu1 %v1039_v0 }
  0x5f   :  { %221 = vmatmul.mubr.f32.gmra.mrb[2].mxu0 %v1120_v35 }
  0x60   :  { %298 = vmatmul.mubr.f32.gmra.mrb[2].mxu1 %v1120_v35 }
 0x12e   :  { %v216_v47 = vpop.f32.mrb[0].mxu0 }
 0x12f   :  { %v217_v0 = vadd.f32 %v216_v47, %v133_v43  ;;  %v293_v48 = vpop.f32.mrb[0].mxu1  ;;  %v218_v49 = vpop.f32.mrb[1].mxu0 }
 0x130   :  { %v294_v50 = vadd.f32 %v293_v48, %v141_v44  ;;  %v219_v51 = vadd.f32 %v218_v49, %v137_v45  ;;  %v295_v52 = vpop.f32.mrb[1].mxu1  ;;  %v468_v48 = vld [vmem:[#allocation7 + $0x98] sm:$0xff]  ;;  %v497_v49 = vld [vmem:[#allocation7 + $0x180] sm:$0xff] }
 0x131   :  { %v304_v53 = vmul.f32 0.5, %v217_v0  ;;  %v296_v54 = vadd.f32 %v295_v52, %v145_v46 }
 0x132   :  { %v306_v55 = vmul.f32 0.5, %v294_v50  ;;  %v305_v56 = vmul.f32 0.5, %v219_v51  ;;  %v222_v57 = vpop.f32.mrb[2].mxu0 }
 0x133   :  { %906 = vtanh.f32 %v304_v53  ;;  %v307_v58 = vmul.f32 0.5, %v296_v54  ;;  %v223_v59 = vadd.f32 %v222_v57, %v133_v43  ;;  %v299_v60 = vpop.f32.mrb[2].mxu1  ;;  %v224_v61 = vpop.f32.mrb[3].mxu0  ;;  %v449_v43 = vld [vmem:[#allocation7] sm:$0xff]  ;;  %v498_v53 = vld [vmem:[#allocation7 + $0x188] sm:$0xff] }
 0x134   :  { %908 = vtanh.f32 %v306_v55  ;;  %v301_v62 = vpop.f32.mrb[3].mxu1  ;;  %v225_v1 = vadd.f32 %v224_v61, %v137_v45  ;;  %v1128_v3 = vadd.f32 %v299_v60, %v141_v44  ;;  %v450_v44 = vld [vmem:[#allocation7 + $0x8] sm:$0xff]  ;;  %v452_v55 = vld [vmem:[#allocation7 + $0x18] sm:$0xff]  ;;  %v865_v57 = vpack.c.bf16 %v498_v53, %v497_v49 }
 0x135   :  { %910 = vtanh.f32 %v305_v56  ;;  %v308_v63 = vmul.f32 0.5, %v223_v59  ;;  %v1130_v5 = vadd.f32 %v301_v62, %v145_v46  ;;  %v835_v47 = vpack.c.bf16 %v450_v44, %v449_v43  ;;  %v482_v60 = vld [vmem:[#allocation7 + $0x108] sm:$0xff]  ;;  %v469_v62 = vld [vmem:[#allocation7 + $0xa0] sm:$0xff]  ;;  %v487_v44 = vld [vmem:[#allocation7 + $0x130] sm:$0xff] }
 0x136   :  { %912 = vtanh.f32 %v307_v58  ;;  %v309_v2 = vmul.f32 0.5, %v225_v1  ;;  %v310_v8 = vmul.f32 0.5, %v1128_v3  ;;  %866 = vmatprep.subr.bf16.mxu1 %v865_v57  ;;  %v490_v57 = vld [vmem:[#allocation7 + $0x148] sm:$0xff] }
 0x137   :  { %914 = vtanh.f32 %v308_v63  ;;  %v311_v16 = vmul.f32 0.5, %v1130_v5  ;;  %836 = vmatpush3.bf16.msra.mxu0 %v835_v47  ;;  %v470_v63 = vld [vmem:[#allocation7 + $0xa8] sm:$0xff]  ;;  %v475_v47 = vld [vmem:[#allocation7 + $0xd0] sm:$0xff] }
 0x138   :  { %916 = vtanh.f32 %v309_v2 }
 0x139   :  { %918 = vtanh.f32 %v310_v8  ;;  %v454_v8 = vld [vmem:[#allocation7 + $0x28] sm:$0xff] }
 0x13a   :  { %920 = vtanh.f32 %v311_v16 }
 0x13d   :  { %v907_v4 = vpop.eup %906 }
 0x13e   :  { %v909_v6 = vpop.eup %908  ;;  %v320_v7 = vadd.f32 1.0, %v907_v4  ;;  %v841_v4 = vpack.c.bf16 %v470_v63, %v469_v62  ;;  %v508_v63 = vld [vmem:[#allocation7 + $0x1d8] sm:$0xff] }
 0x13f   :  { %v911_v9 = vpop.eup %910  ;;  %v322_v10 = vadd.f32 1.0, %v909_v6  ;;  %v500_v6 = vld [vmem:[#allocation7 + $0x198] sm:$0xff] }
 0x140   :  { %v913_v11 = vpop.eup %912  ;;  %v328_v12 = vmul.f32 0.5, %v320_v7  ;;  %v321_v13 = vadd.f32 1.0, %v911_v9  ;;  %v453_v7 = vld [vmem:[#allocation7 + $0x20] sm:$0xff] }
 0x141   :  { %v330_v14 = vmul.f32 0.5, %v322_v10  ;;  %v323_v15 = vadd.f32 1.0, %v913_v11  ;;  %v915_v19 = vpop.eup %914  ;;  %v843_v10 = vpack.c.bf16 %v454_v8, %v453_v7  ;;  %v483_v11 = vld [vmem:[#allocation7 + $0x110] sm:$0xff]  ;;  %v492_v8 = vld [vmem:[#allocation7 + $0x158] sm:$0xff] }
 0x142   :  { %v1134_v17 = vmul.f32 %v328_v12, %v217_v0  ;;  %v329_v18 = vmul.f32 0.5, %v321_v13  ;;  %v324_v23 = vadd.f32 1.0, %v915_v19  ;;  %v917_v24 = vpop.eup %916  ;;  %v467_v0 = vld [vmem:[#allocation7 + $0x90] sm:$0xff]  ;;  %v484_v12 = vld [vmem:[#allocation7 + $0x118] sm:$0xff]  ;;  %v502_v19 = vld [vmem:[#allocation7 + $0x1a8] sm:$0xff] }
 0x143   :  { %v1136_v20 = vmul.f32 %v330_v14, %v294_v50  ;;  %v331_v21 = vmul.f32 0.5, %v323_v15  ;;  %v325_v27 = vadd.f32 1.0, %v917_v24  ;;  %v919_v30 = vpop.eup %918  ;;  %v837_v52 = vpack.c.bf16 %v468_v48, %v467_v0  ;;  %v472_v14 = vld [vmem:[#allocation7 + $0xb8] sm:$0xff]  ;;  %v501_v15 = vld [vmem:[#allocation7 + $0x1a0] sm:$0xff]  ;;  %v491_v7 = vld [vmem:[#allocation7 + $0x150] sm:$0xff] }
 0x144   :  { %344 = vadd.xlane.f32.xlu0 %v1134_v17  ;;  %v1140_v22 = vmul.f32 %v329_v18, %v219_v51  ;;  %v332_v26 = vmul.f32 0.5, %v324_v23  ;;  %v351_v28 = vmul.f32 %v1134_v17, %v1134_v17  ;;  %v921_v33 = vpop.eup %920  ;;  %v326_v36 = vadd.f32 1.0, %v919_v30  ;;  %v456_v23 = vld [vmem:[#allocation7 + $0x38] sm:$0xff]  ;;  %v505_v48 = vld [vmem:[#allocation7 + $0x1c0] sm:$0xff] }
 0x145   :  { %397 = vadd.xlane.f32.xlu1 %v1136_v20  ;;  %v1142_v25 = vmul.f32 %v331_v21, %v296_v54  ;;  %v403_v29 = vmul.f32 %v1136_v20, %v1136_v20  ;;  %v333_v32 = vmul.f32 0.5, %v325_v27  ;;  %v327_v41 = vadd.f32 1.0, %v921_v33  ;;  %v451_v54 = vld [vmem:[#allocation7 + $0x10] sm:$0xff]  ;;  %838 = vmatprep.subr.bf16.mxu0 %v837_v52  ;;  %v474_v33 = vld [vmem:[#allocation7 + $0xc8] sm:$0xff]  ;;  %v476_v0 = vld [vmem:[#allocation7 + $0xd8] sm:$0xff] }
 0x146   :  { %v1150_v31 = vmul.f32 %v332_v26, %v223_v59  ;;  %v377_v37 = vmul.f32 %v1140_v22, %v1140_v22  ;;  %v334_v45 = vmul.f32 0.5, %v326_v36  ;;  %v839_v58 = vpack.c.bf16 %v452_v55, %v451_v54  ;;  %v481_v59 = vld [vmem:[#allocation7 + $0x100] sm:$0xff]  ;;  %v455_v21 = vld [vmem:[#allocation7 + $0x30] sm:$0xff]  ;;  %v460_v52 = vld [vmem:[#allocation7 + $0x58] sm:$0xff] }
 0x147   :  { %v1155_v40 = vmul.f32 %v333_v32, %v225_v1  ;;  %v429_v46 = vmul.f32 %v1142_v25, %v1142_v25  ;;  %v335_v50 = vmul.f32 0.5, %v327_v41  ;;  %v867_v61 = vpack.c.bf16 %v482_v60, %v481_v59  ;;  %v499_v1 = vld [vmem:[#allocation7 + $0x190] sm:$0xff]  ;;  %v473_v32 = vld [vmem:[#allocation7 + $0xc0] sm:$0xff]  ;;  %v458_v41 = vld [vmem:[#allocation7 + $0x48] sm:$0xff] }
 0x148   :  { %371 = vadd.xlane.f32.xlu0 %v1140_v22  ;;  %v352_v51 = vmul.f32 %v1150_v31, %v1150_v31  ;;  %v1163_v56 = vmul.f32 %v334_v45, %v1128_v3  ;;  %840 = vmatpush3.bf16.msra.mxu0 %v839_v58  ;;  %v869_v9 = vpack.c.bf16 %v500_v6, %v499_v1  ;;  %v503_v36 = vld [vmem:[#allocation7 + $0x1b0] sm:$0xff]  ;;  %v488_v45 = vld [vmem:[#allocation7 + $0x138] sm:$0xff]  ;;  %v489_v55 = vld [vmem:[#allocation7 + $0x140] sm:$0xff] }
 0x149   :  { %423 = vadd.xlane.f32.xlu1 %v1142_v25  ;;  %v1167_v2 = vmul.f32 %v335_v50, %v1130_v5  ;;  %v378_v3 = vmul.f32 %v1155_v40, %v1155_v40  ;;  %868 = vmatpush3.bf16.msra.mxu1 %v867_v61  ;;  %v871_v13 = vpack.c.bf16 %v484_v12, %v483_v11  ;;  %v471_v5 = vld [vmem:[#allocation7 + $0xb0] sm:$0xff]  ;;  %v506_v50 = vld [vmem:[#allocation7 + $0x1c8] sm:$0xff]  ;;  %v477_v59 = vld [vmem:[#allocation7 + $0xe0] sm:$0xff] }
 0x14a   :  { %842 = vmatprep.subr.bf16.mxu0 %v841_v4  ;;  %870 = vmatprep.subr.bf16.mxu1 %v869_v9  ;;  %v845_v18 = vpack.c.bf16 %v472_v14, %v471_v5  ;;  %v404_v24 = vmul.f32 %v1163_v56, %v1163_v56  ;;  %v873_v26 = vpack.c.bf16 %v502_v19, %v501_v15  ;;  %v478_v60 = vld [vmem:[#allocation7 + $0xe8] sm:$0xff]  ;;  %v507_v61 = vld [vmem:[#allocation7 + $0x1d0] sm:$0xff]  ;;  %v461_v1 = vld [vmem:[#allocation7 + $0x60] sm:$0xff] }
 0x14b   :  { %v430_v16 = vmul.f32 %v1167_v2, %v1167_v2  ;;  %v847_v27 = vpack.c.bf16 %v456_v23, %v455_v21  ;;  %v877_v42 = vpack.c.bf16 %v504_v38, %v503_v36  ;;  %v851_v43 = vpack.c.bf16 %v458_v41, %v457_v39  ;;  %v480_v11 = vld [vmem:[#allocation7 + $0xf8] sm:$0xff]  ;;  %v509_v12 = vld [vmem:[#allocation7 + $0x1e0] sm:$0xff]  ;;  %v510_v5 = vld [vmem:[#allocation7 + $0x1e8] sm:$0xff] }
 0x14c   :  { %353 = vadd.xlane.f32.xlu0 %v351_v28  ;;  %844 = vmatpush3.bf16.msra.mxu0 %v843_v10  ;;  %v485_v28 = vld [vmem:[#allocation7 + $0x120] sm:$0xff]  ;;  %v853_v49 = vpack.c.bf16 %v476_v0, %v475_v47  ;;  %v881_v53 = vpack.c.bf16 %v506_v50, %v505_v48  ;;  %v883_v58 = vpack.c.bf16 %v490_v57, %v489_v55  ;;  %v479_v10 = vld [vmem:[#allocation7 + $0xf0] sm:$0xff]  ;;  %v464_v15 = vld [vmem:[#allocation7 + $0x78] sm:$0xff] }
 0x14d   :  { %405 = vadd.xlane.f32.xlu1 %v403_v29  ;;  %872 = vmatpush3.bf16.msra.mxu1 %v871_v13  ;;  %v486_v29 = vld [vmem:[#allocation7 + $0x128] sm:$0xff]  ;;  %v857_v62 = vpack.c.bf16 %v478_v60, %v477_v59  ;;  %v885_v4 = vpack.c.bf16 %v508_v63, %v507_v61  ;;  %v887_v9 = vpack.c.bf16 %v492_v8, %v491_v7  ;;  %v463_v14 = vld [vmem:[#allocation7 + $0x70] sm:$0xff]  ;;  %v493_v19 = vld [vmem:[#allocation7 + $0x160] sm:$0xff] }
 0x14e   :  { %846 = vmatprep.subr.bf16.mxu0 %v845_v18  ;;  %v875_v30 = vpack.c.bf16 %v486_v29, %v485_v28  ;;  %874 = vmatprep.subr.bf16.mxu1 %v873_v26  ;;  %v861_v13 = vpack.c.bf16 %v480_v11, %v479_v10  ;;  %v863_v18 = vpack.c.bf16 %v464_v15, %v463_v14  ;;  %v494_v21 = vld [vmem:[#allocation7 + $0x168] sm:$0xff]  ;;  %v512_v26 = vld [vmem:[#allocation7 + $0x1f8] sm:$0xff]  ;;  %v495_v28 = vld [vmem:[#allocation7 + $0x170] sm:$0xff] }
 0x14f   :  { %v891_v23 = vpack.c.bf16 %v494_v21, %v493_v19  ;;  %v496_v29 = vld [vmem:[#allocation7 + $0x178] sm:$0xff] }
 0x150   :  { %346 = vadd.xlane.f32.xlu0 %v1150_v31  ;;  %848 = vmatpush3.bf16.msra.mxu0 %v847_v27 }
 0x151   :  { %379 = vadd.xlane.f32.xlu1 %v377_v37  ;;  %876 = vmatpush3.bf16.msra.mxu1 %v875_v30  ;;  %v849_v37 = vpack.c.bf16 %v474_v33, %v473_v32  ;;  %v895_v30 = vpack.c.bf16 %v496_v29, %v495_v28 }
 0x152   :  { %878 = vmatprep.subr.bf16.mxu1 %v877_v42 }
 0x153   :  { %850 = vmatprep.subr.bf16.mxu0 %v849_v37 }
 0x154   :  { %373 = vadd.xlane.f32.xlu0 %v1155_v40  ;;  %852 = vmatpush3.bf16.msra.mxu0 %v851_v43 }
 0x155   :  { %431 = vadd.xlane.f32.xlu1 %v429_v46  ;;  %v879_v46 = vpack.c.bf16 %v488_v45, %v487_v44  ;;  %854 = vmatprep.subr.bf16.mxu0 %v853_v49 }
 0x157   :  { %880 = vmatpush3.bf16.msra.mxu1 %v879_v46 }
 0x158   :  { %355 = vadd.xlane.f32.xlu0 %v352_v51  ;;  %v459_v51 = vld [vmem:[#allocation7 + $0x50] sm:$0xff]  ;;  %882 = vmatprep.subr.bf16.mxu1 %v881_v53 }
 0x159   :  { %399 = vadd.xlane.f32.xlu1 %v1163_v56  ;;  %v855_v54 = vpack.c.bf16 %v460_v52, %v459_v51 }
 0x15b   :  { %856 = vmatpush3.bf16.msra.mxu0 %v855_v54  ;;  %884 = vmatpush3.bf16.msra.mxu1 %v883_v58 }
 0x15c   :  { %381 = vadd.xlane.f32.xlu0 %v378_v3  ;;  %v462_v3 = vld [vmem:[#allocation7 + $0x68] sm:$0xff]  ;;  %858 = vmatprep.subr.bf16.mxu0 %v857_v62 }
 0x15d   :  { %425 = vadd.xlane.f32.xlu1 %v1167_v2  ;;  %v859_v6 = vpack.c.bf16 %v462_v3, %v461_v1  ;;  %886 = vmatprep.subr.bf16.mxu1 %v885_v4 }
 0x15f   :  { %860 = vmatpush3.bf16.msra.mxu0 %v859_v6  ;;  %888 = vmatpush3.bf16.msra.mxu1 %v887_v9 }
 0x160   :  { %433 = vadd.xlane.f32.xlu0 %v430_v16  ;;  %v889_v16 = vpack.c.bf16 %v510_v5, %v509_v12  ;;  %862 = vmatprep.subr.bf16.mxu0 %v861_v13 }
 0x161   :  { %407 = vadd.xlane.f32.xlu1 %v404_v24  ;;  %v511_v24 = vld [vmem:[#allocation7 + $0x1f0] sm:$0xff] }
 0x162   :  { %890 = vmatprep.subr.bf16.mxu1 %v889_v16  ;;  %v893_v27 = vpack.c.bf16 %v512_v26, %v511_v24 }
 0x163   :  { %864 = vmatpush3.bf16.msra.mxu0 %v863_v18  ;;  %892 = vmatpush3.bf16.msra.mxu1 %v891_v23 }
 0x164   :  { %894 = vmatprep.subr.bf16.mxu1 %v893_v27 }
 0x167   :  { %896 = vmatpush3.bf16.msra.mxu1 %v895_v30 }
 0x1d1   :  { %v345_v32 = vpop.xlane.xlu0 %344 }
 0x1d2   :  { %v398_v33 = vpop.xlane.xlu1 %397  ;;  %v1176_v37 = vmul.f32 0.0078125, %v345_v32 }
 0x1d3   :  { %v1178_v41 = vmul.f32 0.0078125, %v398_v33 }
 0x1d4   :  { %v359_v42 = vmul.f32 %v1176_v37, %v1176_v37  ;;  %v363_v30 = vsub.f32 %v1134_v17, %v1176_v37 }
 0x1d5   :  { %v372_v36 = vpop.xlane.xlu0 %371  ;;  %v411_v48 = vmul.f32 %v1178_v41, %v1178_v41 }
 0x1d6   :  { %v424_v38 = vpop.xlane.xlu1 %423  ;;  %v375_v45 = vmul.f32 0.0078125, %v372_v36 }
 0x1d7   :  { %v427_v50 = vmul.f32 0.0078125, %v424_v38 }
 0x1d8   :  { %v385_v51 = vmul.f32 %v375_v45, %v375_v45  ;;  %v389_v23 = vsub.f32 %v1140_v22, %v375_v45 }
 0x1d9   :  { %v354_v39 = vpop.xlane.xlu0 %353  ;;  %v437_v60 = vmul.f32 %v427_v50, %v427_v50 }
 0x1da   :  { %v406_v43 = vpop.xlane.xlu1 %405  ;;  %v357_v44 = vmul.f32 0.0078125, %v354_v39 }
 0x1db   :  { %v409_v46 = vmul.f32 0.0078125, %v406_v43 }
 0x1dc   :  { %v361_v47 = vsub.f32 %v357_v44, %v359_v42  ;;  %v441_v44 = vsub.f32 %v1142_v25, %v427_v50 }
 0x1dd   :  { %v347_v0 = vpop.xlane.xlu0 %346  ;;  %v413_v53 = vsub.f32 %v409_v46, %v411_v48  ;;  %v415_v46 = vsub.f32 %v1136_v20, %v1178_v41 }
 0x1de   :  { %v380_v49 = vpop.xlane.xlu1 %379  ;;  %v365_v54 = vadd.f32 1e-05, %v361_v47  ;;  %v1184_v58 = vmul.f32 0.0078125, %v347_v0 }
 0x1df   :  { %v383_v52 = vmul.f32 0.0078125, %v380_v49  ;;  %v417_v63 = vadd.f32 1e-05, %v413_v53 }
 0x1e0   :  { %922 = vrsqrt.f32 %v365_v54  ;;  %v360_v4 = vmul.f32 %v1184_v58, %v1184_v58  ;;  %v364_v25 = vsub.f32 %v1150_v31, %v1184_v58  ;;  %v692_v31 = vld [vmem:[%s1223_s4] ss:$0 sm:$0xff]  ;;  %s1004_s4 = scalar_lea.vmem %s680_s9, 256 }
 0x1e1   :  { %v387_v55 = vsub.f32 %v383_v52, %v385_v51  ;;  %v374_v57 = vpop.xlane.xlu0 %373  ;;  %p1005_p10 = scmp.ne.s32.totalorder %s680_s9, %s1004_s4  ;;  %p1010_p12 = scmp.lt.s32.totalorder %s1004_s4, %s1004_s4 }
 0x1e2   :  { %v432_v59 = vpop.xlane.xlu1 %431  ;;  %v376_v6 = vmul.f32 0.0078125, %v374_v57 }
 0x1e3   :  { %v391_v61 = vadd.f32 1e-05, %v387_v55  ;;  %v435_v62 = vmul.f32 0.0078125, %v432_v59  ;;  %p1011_p13 = por %p1010_p12, %p1009_p11 }
 0x1e4   :  { %v386_v12 = vmul.f32 %v376_v6, %v376_v6  ;;  %v390_v48 = vsub.f32 %v1155_v40, %v376_v6 }
 0x1e5   :  { %924 = vrsqrt.f32 %v391_v61  ;;  %v439_v1 = vsub.f32 %v435_v62, %v437_v60  ;;  %v356_v3 = vpop.xlane.xlu0 %355  ;;  %p1012_p0 = pnand %p1011_p13, %p1005_p10 }
 0x1e6   :  { %v400_v7 = vpop.xlane.xlu1 %399  ;;  %v358_v8 = vmul.f32 0.0078125, %v356_v3  ;;  %926 = vrsqrt.f32 %v417_v63 }
 0x1e7   :  { %v443_v9 = vadd.f32 1e-05, %v439_v1  ;;  %v402_v14 = vmul.f32 0.0078125, %v400_v7 }
 0x1e8   :  { %v362_v10 = vsub.f32 %v358_v8, %v360_v4 }
 0x1e9   :  { %928 = vrsqrt.f32 %v443_v9  ;;  %v382_v11 = vpop.xlane.xlu0 %381  ;;  %v412_v32 = vmul.f32 %v402_v14, %v402_v14  ;;  %v416_v41 = vsub.f32 %v1163_v56, %v402_v14 }
 0x1ea   :  { %v426_v13 = vpop.xlane.xlu1 %425  ;;  %v384_v5 = vmul.f32 0.0078125, %v382_v11  ;;  %v366_v15 = vadd.f32 1e-05, %v362_v10  ;;  %v923_v21 = vpop.eup %922 }
 0x1eb   :  { %v428_v16 = vmul.f32 0.0078125, %v426_v13  ;;  %v369_v42 = vmul.f32 %v923_v21, %v363_v30 }
 0x1ec   :  { %v388_v18 = vsub.f32 %v384_v5, %v386_v12  ;;  %930 = vrsqrt.f32 %v366_v15 }
 0x1ed   :  { %v434_v19 = vpop.xlane.xlu0 %433  ;;  %v438_v24 = vmul.f32 %v428_v16, %v428_v16  ;;  %v442_v52 = vsub.f32 %v1167_v2, %v428_v16 }
 0x1ee   :  { %v392_v26 = vadd.f32 1e-05, %v388_v18  ;;  %v408_v27 = vpop.xlane.xlu1 %407  ;;  %v436_v28 = vmul.f32 0.0078125, %v434_v19 }
 0x1ef   :  { %v925_v29 = vpop.eup %924  ;;  %v410_v33 = vmul.f32 0.0078125, %v408_v27 }
 0x1f0   :  { %932 = vrsqrt.f32 %v392_v26  ;;  %v440_v36 = vsub.f32 %v436_v28, %v438_v24  ;;  %v395_v38 = vmul.f32 %v925_v29, %v389_v23  ;;  %v927_v43 = vpop.eup %926 }
 0x1f1   :  { %v414_v39 = vsub.f32 %v410_v33, %v412_v32  ;;  %v421_v37 = vmul.f32 %v927_v43, %v415_v46 }
 0x1f2   :  { %v444_v22 = vadd.f32 1e-05, %v440_v36  ;;  %584 = vmatprep.mubr.f32.mxu0 %v395_v38 }
 0x1f3   :  { %v929_v45 = vpop.eup %928  ;;  %v418_v47 = vadd.f32 1e-05, %v414_v39  ;;  %585 = vmatmul.mubr.f32.vlgmr.msra.gmra.mrb[4].mxu0 %v369_v42 }
 0x1f4   :  { %934 = vrsqrt.f32 %v444_v22  ;;  %v447_v17 = vmul.f32 %v929_v45, %v441_v44 }
 0x1f5   :  { %936 = vrsqrt.f32 %v418_v47 }
 0x1f6   :  { %659 = vmatprep.mubr.f32.mxu1 %v447_v17  ;;  %v931_v0 = vpop.eup %930 }
 0x1f7   :  { %660 = vmatmul.mubr.f32.vlgmr.msra.gmra.mrb[4].mxu1 %v421_v37  ;;  %v370_v51 = vmul.f32 %v931_v0, %v364_v25 }
 0x1fa   :  { %v933_v49 = vpop.eup %932 }
 0x1fb   :  { %v396_v50 = vmul.f32 %v933_v49, %v390_v48 }
 0x1fd   :  { %589 = vmatprep.mubr.f32.mxu0 %v396_v50 }
 0x1fe   :  { %v935_v20 = vpop.eup %934  ;;  %590 = vmatmul.mubr.f32.gmra.mrb[6].mxu0 %v370_v51 }
 0x1ff   :  { %v937_v53 = vpop.eup %936  ;;  %v448_v54 = vmul.f32 %v935_v20, %v442_v52 }
 0x200   :  { %v422_v55 = vmul.f32 %v937_v53, %v416_v41 }
 0x201   :  { %664 = vmatprep.mubr.f32.mxu1 %v448_v54 }
 0x202   :  { %665 = vmatmul.mubr.f32.gmra.mrb[6].mxu1 %v422_v55 }
 0x2c6   :  { %v725_v57 = vpop.f32.mrb[4].mxu0 }
 0x2c7   :  { %v726_v40 = vpop.f32.mrb[5].mxu0 }
 0x2c8   :  { %v727_v59 = vadd.f32 %v726_v40, %v725_v57 }
 0x2ca   :  { %v763_v58 = vpop.f32.mrb[4].mxu1  ;;  %v587_v2 = vadd.f32 %v727_v59, %v692_v31 }
 0x2cb   :  { %v764_v60 = vpop.f32.mrb[5].mxu1 }
 0x2cc   :  { %v765_v61 = vadd.f32 %v764_v60, %v763_v58 }
 0x2ce   :  { %v662_v62 = vadd.f32 %v765_v61, %v587_v2 }
 0x2d0   :  { %v670_v56 = vadd.f32 %v662_v62, %v1115_v34 }
 0x2d1   :  { %v728_v63 = vpop.f32.mrb[6].mxu0 }
 0x2d2   :  { %672 = vst [vmem:[#allocation8] sm:$0xff] %v670_v56  ;;  %v729_v1 = vpop.f32.mrb[7].mxu0 }
 0x2d3   :  { %v730_v3 = vadd.f32 %v729_v1, %v728_v63 }
 0x2d5   :  { %v766_v4 = vpop.f32.mrb[6].mxu1  ;;  %v592_v7 = vadd.f32 %v730_v3, %v692_v31 }
 0x2d6   :  { %v767_v6 = vpop.f32.mrb[7].mxu1 }
 0x2d7   :  { %v768_v8 = vadd.f32 %v767_v6, %v766_v4 }
 0x2d9   :  { %v667_v9 = vadd.f32 %v768_v8, %v592_v7 }
 0x2db   :  { %v671_v10 = vadd.f32 %v667_v9, %v1120_v35 }
 0x2dd   :  { %673 = vst [vmem:[#allocation8 + $0x8] sm:$0xff] %v671_v10 }
 0x2de   :  { %1015 = shalt.err (!%p1012_p0)
}
 0x2df   :  { %s1016_s12 = scalar_lea.hbm %s1224_s5, 256 }
 0x2e0   :  { %p1017_p1 = scmp.ne.s32.totalorder %s1224_s5, %s1016_s12  ;;  %p1020_p2 = scmp.lt.u32.totalorder %s1016_s12, %s1224_s5 }
 0x2e2   :  { %p1022_p3 = pnand %p1020_p2, %p1017_p1 }
 0x2e4   :  { %1025 = shalt.err (!%p1022_p3)
}
 0x2e5   :  { %685 = dma.vmem_to_hbm [thread:$0]  %s680_s9, 256, %s1224_s5, [#allocation4], %s1036_s1, %s1036_s1, %s1037_s17  }
 0x2e6   :  { %1030 = dma.done.wait [#allocation4], 256  }
 0x2e7   :  { %1031 = vsyncadd [#allocation4], 4294967040 }
 0x2e8   :  { %689 = vsyncpa [#allocation3], 1 }
 0x2e9   :  { %690 = vsyncpa [#allocation6], 1 }
 0x2ea   :  { %691 = vsyncpa [#allocation4], 1 }

// kernel: tpu_custom_call.1
= control target key start
LH: loop header
LB: loop body
LE: loop exit
PB: predicated region body
PF: predicated region fallthrough
CT: control target
= control target key end

     0   :  { %10 = vsyncpa [#allocation3], 0  ;;  %s1219_s0 = inlined_call_operand.hbm [shape: f32[16,128], index: 0, kind: input, shape index: {}]   ;;  %s1220_s1 = inlined_call_operand.hbm [shape: f32[128,512], index: 1, kind: input, shape index: {}]   ;;  %s1221_s2 = inlined_call_operand.vmem [shape: f32[1,512], index: 2, kind: input, shape index: {}]   ;;  %s1222_s3 = inlined_call_operand.hbm [shape: f32[512,128], index: 3, kind: input, shape index: {}]   ;;  %s1223_s4 = inlined_call_operand.vmem [shape: f32[1,128], index: 4, kind: input, shape index: {}]   ;;  %s1224_s5 = inlined_call_operand.hbm [shape: f32[16,128], index: 5, kind: output, shape index: {}]  }
   0x1   :  { %11 = vsyncpa [#allocation6], 0 }
   0x2   :  { %12 = vsyncpa [#allocation4], 0  ;;  %s1032_s18 = smov [#allocation5]   ;;  %s938_s22 = scalar_lea.hbm %s1220_s1, 8192 }
   0x3   :  { %s30_s19 = sshll.u32 %s1032_s18, 4  ;;  %p939_p0 = scmp.ne.s32.totalorder %s1220_s1, %s938_s22  ;;  %s31_s19 = int_to_ptr.vmem [resolvable:$true] %s30_s19 }
   0x4   :  { %p942_p1 = scmp.lt.u32.totalorder %s938_s22, %s1220_s1 }
   0x6   :  { %p944_p2 = pnand %p942_p1, %p939_p0 }
   0x8   :  { %947 = shalt.err (!%p944_p2)
}
   0x9   :  { %s948_s27 = scalar_lea.vmem %s31_s19, 8192  ;;  %p953_p4 = scmp.lt.s32.totalorder %s31_s19, %s31_s19 }
   0xa   :  { %p949_p3 = scmp.ne.s32.totalorder %s31_s19, %s948_s27  ;;  %p954_p5 = scmp.lt.s32.totalorder %s948_s27, %s948_s27 }
   0xc   :  { %p955_p6 = por %p954_p5, %p953_p4 }
   0xe   :  { %p956_p7 = pnand %p955_p6, %p949_p3 }
  0x10   :  { %959 = shalt.err (!%p956_p7)
}
  0x11   :  { %s1033_s28 = smov 512   ;;  %s1034_s29 = smov 32  }
  0x12   :  { %36 = dma.hbm_to_vmem [thread:$0]  %s1220_s1, 8192, %s31_s19, [#allocation6], %s1033_s28, %s1033_s28, %s1034_s29  }
  0x13   :  { %s1035_s7 = smov [#allocation2]   ;;  %s960_s11 = scalar_lea.hbm %s1219_s0, 256 }
  0x14   :  { %s18_s8 = sshll.u32 %s1035_s7, 4  ;;  %p961_p8 = scmp.ne.s32.totalorder %s1219_s0, %s960_s11  ;;  %s19_s8 = int_to_ptr.vmem [resolvable:$true] %s18_s8 }
  0x15   :  { %p964_p9 = scmp.lt.u32.totalorder %s960_s11, %s1219_s0 }
  0x17   :  { %p966_p10 = pnand %p964_p9, %p961_p8 }
  0x19   :  { %969 = shalt.err (!%p966_p10)
}
  0x1a   :  { %s970_s16 = scalar_lea.vmem %s19_s8, 256  ;;  %p975_p12 = scmp.lt.s32.totalorder %s19_s8, %s19_s8 }
  0x1b   :  { %p971_p11 = scmp.ne.s32.totalorder %s19_s8, %s970_s16  ;;  %p976_p13 = scmp.lt.s32.totalorder %s970_s16, %s970_s16 }
  0x1d   :  { %p977_p0 = por %p976_p13, %p975_p12 }
  0x1f   :  { %p978_p1 = pnand %p977_p0, %p971_p11 }
  0x21   :  { %981 = shalt.err (!%p978_p1)
}
  0x22   :  { %s1036_s1 = smov 128   ;;  %s1037_s17 = smov 8  }
  0x23   :  { %24 = dma.hbm_to_vmem [thread:$0]  %s1219_s0, 256, %s19_s8, [#allocation3], %s1036_s1, %s1036_s1, %s1037_s17  }
  0x24   :  { %s1038_s20 = smov [#allocation7]   ;;  %s982_s24 = scalar_lea.hbm %s1222_s3, 8192 }
  0x25   :  { %s44_s21 = sshll.u32 %s1038_s20, 4  ;;  %p983_p2 = scmp.ne.s32.totalorder %s1222_s3, %s982_s24  ;;  %s45_s21 = int_to_ptr.vmem [resolvable:$true] %s44_s21 }
  0x26   :  { %p986_p3 = scmp.lt.u32.totalorder %s982_s24, %s1222_s3 }
  0x28   :  { %p988_p4 = pnand %p986_p3, %p983_p2 }
  0x2a   :  { %991 = shalt.err (!%p988_p4)
}
  0x2b   :  { %s992_s29 = scalar_lea.vmem %s45_s21, 8192  ;;  %p997_p6 = scmp.lt.s32.totalorder %s45_s21, %s45_s21 }
  0x2c   :  { %p993_p5 = scmp.ne.s32.totalorder %s45_s21, %s992_s29  ;;  %p998_p7 = scmp.lt.s32.totalorder %s992_s29, %s992_s29 }
  0x2e   :  { %p999_p8 = por %p998_p7, %p997_p6 }
  0x30   :  { %p1000_p9 = pnand %p999_p8, %p993_p5 }
  0x32   :  { %1003 = shalt.err (!%p1000_p9)
}
  0x33   :  { %50 = dma.hbm_to_vmem [thread:$0]  %s1222_s3, 8192, %s45_s21, [#allocation6], %s1036_s1, %s1036_s1, %s1037_s17  }
  0x34   :  { %1026 = dma.done.wait [#allocation3], 256  }
  0x35   :  { %1027 = vsyncadd [#allocation3], 4294967040 }
  0x36   :  { %1028 = dma.done.wait [#allocation6], 16384  }
  0x37   :  { %1029 = vsyncadd [#allocation6], 4294950912  ;;  %v1039_v0 = vmov 0.0   ;;  %v65_v1 = vld [vmem:[#allocation5 + $0x8] sm:$0xff]  ;;  %v67_v3 = vld [vmem:[#allocation5 + $0x18] sm:$0xff]  ;;  %s1040_s8 = smov [#allocation8]  }
  0x38   :  { %214 = vmatprep.mubr.f32.mxu0 %v1039_v0  ;;  %291 = vmatprep.mubr.f32.mxu1 %v1039_v0  ;;  %v69_v2 = vld [vmem:[#allocation5 + $0x28] sm:$0xff]  ;;  %v71_v5 = vld [vmem:[#allocation5 + $0x38] sm:$0xff]  ;;  %v64_v6 = vld [vmem:[#allocation5] sm:$0xff]  ;;  %s679_s9 = sshll.u32 %s1040_s8, 4  ;;  %s680_s9 = int_to_ptr.vmem [resolvable:$true] %s679_s9 }
  0x39   :  { %v769_v4 = vpack.c.bf16 %v69_v2, %v65_v1  ;;  %v68_v7 = vld [vmem:[#allocation5 + $0x20] sm:$0xff]  ;;  %v801_v8 = vpack.c.bf16 %v71_v5, %v67_v3  ;;  %v66_v10 = vld [vmem:[#allocation5 + $0x10] sm:$0xff]  ;;  %v73_v12 = vld [vmem:[#allocation5 + $0x48] sm:$0xff]  ;;  %p1009_p11 = scmp.lt.s32.totalorder %s680_s9, %s680_s9 }
  0x3a   :  { %v771_v9 = vpack.c.bf16 %v68_v7, %v64_v6  ;;  %v70_v11 = vld [vmem:[#allocation5 + $0x30] sm:$0xff]  ;;  %v77_v14 = vld [vmem:[#allocation5 + $0x68] sm:$0xff]  ;;  %v75_v15 = vld [vmem:[#allocation5 + $0x58] sm:$0xff] }
  0x3b   :  { %770 = vmatprep.subr.bf16.mxu0 %v769_v4  ;;  %v803_v13 = vpack.c.bf16 %v70_v11, %v66_v10  ;;  %v79_v16 = vld [vmem:[#allocation5 + $0x78] sm:$0xff]  ;;  %802 = vmatprep.subr.bf16.mxu1 %v801_v8  ;;  %v773_v17 = vpack.c.bf16 %v77_v14, %v73_v12  ;;  %v72_v19 = vld [vmem:[#allocation5 + $0x40] sm:$0xff]  ;;  %v74_v21 = vld [vmem:[#allocation5 + $0x50] sm:$0xff] }
  0x3c   :  { %772 = vmatpush1.bf16.msra.mxu0 %v771_v9  ;;  %v805_v18 = vpack.c.bf16 %v79_v16, %v75_v15  ;;  %v76_v20 = vld [vmem:[#allocation5 + $0x60] sm:$0xff]  ;;  %v78_v23 = vld [vmem:[#allocation5 + $0x70] sm:$0xff]  ;;  %v81_v24 = vld [vmem:[#allocation5 + $0x88] sm:$0xff] }
  0x3d   :  { %804 = vmatpush1.bf16.msra.mxu1 %v803_v13  ;;  %v775_v22 = vpack.c.bf16 %v76_v20, %v72_v19  ;;  %v85_v25 = vld [vmem:[#allocation5 + $0xa8] sm:$0xff]  ;;  %774 = vmatprep.subr.bf16.mxu0 %v773_v17  ;;  %v807_v26 = vpack.c.bf16 %v78_v23, %v74_v21  ;;  %v83_v28 = vld [vmem:[#allocation5 + $0x98] sm:$0xff]  ;;  %v80_v30 = vld [vmem:[#allocation5 + $0x80] sm:$0xff] }
  0x3e   :  { %806 = vmatprep.subr.bf16.mxu1 %v805_v18  ;;  %v777_v27 = vpack.c.bf16 %v85_v25, %v81_v24  ;;  %v87_v29 = vld [vmem:[#allocation5 + $0xb8] sm:$0xff]  ;;  %v84_v32 = vld [vmem:[#allocation5 + $0xa0] sm:$0xff]  ;;  %v82_v33 = vld [vmem:[#allocation5 + $0x90] sm:$0xff] }
  0x3f   :  { %v809_v31 = vpack.c.bf16 %v87_v29, %v83_v28  ;;  %v86_v34 = vld [vmem:[#allocation5 + $0xb0] sm:$0xff]  ;;  %v779_v35 = vpack.c.bf16 %v84_v32, %v80_v30  ;;  %v89_v36 = vld [vmem:[#allocation5 + $0xc8] sm:$0xff]  ;;  %v91_v38 = vld [vmem:[#allocation5 + $0xd8] sm:$0xff] }
  0x40   :  { %776 = vmatpush1.bf16.msra.mxu0 %v775_v22  ;;  %v93_v37 = vld [vmem:[#allocation5 + $0xe8] sm:$0xff]  ;;  %v811_v39 = vpack.c.bf16 %v86_v34, %v82_v33  ;;  %v95_v41 = vld [vmem:[#allocation5 + $0xf8] sm:$0xff]  ;;  %v88_v42 = vld [vmem:[#allocation5 + $0xc0] sm:$0xff] }
  0x41   :  { %808 = vmatpush1.bf16.msra.mxu1 %v807_v26  ;;  %778 = vmatprep.subr.bf16.mxu0 %v777_v27  ;;  %v781_v40 = vpack.c.bf16 %v93_v37, %v89_v36  ;;  %v92_v43 = vld [vmem:[#allocation5 + $0xe0] sm:$0xff]  ;;  %v813_v44 = vpack.c.bf16 %v95_v41, %v91_v38  ;;  %v90_v45 = vld [vmem:[#allocation5 + $0xd0] sm:$0xff]  ;;  %v97_v47 = vld [vmem:[#allocation5 + $0x108] sm:$0xff]  ;;  %v130_v36 = vlaneseq }
  0x42   :  { %810 = vmatprep.subr.bf16.mxu1 %v809_v31  ;;  %v94_v46 = vld [vmem:[#allocation5 + $0xf0] sm:$0xff]  ;;  %v101_v48 = vld [vmem:[#allocation5 + $0x128] sm:$0xff]  ;;  %v99_v49 = vld [vmem:[#allocation5 + $0x118] sm:$0xff]  ;;  %v783_v51 = vpack.c.bf16 %v92_v43, %v88_v42 }
  0x43   :  { %v103_v50 = vld [vmem:[#allocation5 + $0x138] sm:$0xff]  ;;  %v815_v52 = vpack.c.bf16 %v94_v46, %v90_v45  ;;  %v785_v53 = vpack.c.bf16 %v101_v48, %v97_v47  ;;  %v96_v54 = vld [vmem:[#allocation5 + $0x100] sm:$0xff]  ;;  %v98_v56 = vld [vmem:[#allocation5 + $0x110] sm:$0xff]  ;;  %v131_v37 = vshrl.u32 %v130_v36, 7 }
  0x44   :  { %780 = vmatpush1.bf16.msra.mxu0 %v779_v35  ;;  %v100_v55 = vld [vmem:[#allocation5 + $0x120] sm:$0xff]  ;;  %v817_v57 = vpack.c.bf16 %v103_v50, %v99_v49  ;;  %v102_v58 = vld [vmem:[#allocation5 + $0x130] sm:$0xff]  ;;  %v105_v59 = vld [vmem:[#allocation5 + $0x148] sm:$0xff] }
  0x45   :  { %812 = vmatpush1.bf16.msra.mxu1 %v811_v39  ;;  %782 = vmatprep.subr.bf16.mxu0 %v781_v40  ;;  %v109_v60 = vld [vmem:[#allocation5 + $0x168] sm:$0xff]  ;;  %v107_v61 = vld [vmem:[#allocation5 + $0x158] sm:$0xff]  ;;  %v787_v63 = vpack.c.bf16 %v100_v55, %v96_v54  ;;  %v819_v1 = vpack.c.bf16 %v102_v58, %v98_v56  ;;  %v104_v3 = vld [vmem:[#allocation5 + $0x140] sm:$0xff]  ;;  %v132_v38 = vsub.s32 0, %v131_v37  ;;  %v140_v40 = vsub.s32 2, %v131_v37 }
  0x46   :  { %814 = vmatprep.subr.bf16.mxu1 %v813_v44  ;;  %v111_v62 = vld [vmem:[#allocation5 + $0x178] sm:$0xff]  ;;  %v789_v2 = vpack.c.bf16 %v109_v60, %v105_v59  ;;  %v108_v4 = vld [vmem:[#allocation5 + $0x160] sm:$0xff]  ;;  %v106_v5 = vld [vmem:[#allocation5 + $0x150] sm:$0xff]  ;;  %v136_v41 = vsub.s32 1, %v131_v37  ;;  %v144_v42 = vsub.s32 3, %v131_v37 }
  0x47   :  { %v821_v6 = vpack.c.bf16 %v111_v62, %v107_v61  ;;  %v110_v7 = vld [vmem:[#allocation5 + $0x170] sm:$0xff]  ;;  %v113_v8 = vld [vmem:[#allocation5 + $0x188] sm:$0xff]  ;;  %v115_v10 = vld [vmem:[#allocation5 + $0x198] sm:$0xff]  ;;  %v791_v12 = vpack.c.bf16 %v108_v4, %v104_v3 }
  0x48   :  { %784 = vmatpush1.bf16.msra.mxu0 %v783_v51  ;;  %v117_v9 = vld [vmem:[#allocation5 + $0x1a8] sm:$0xff]  ;;  %v119_v11 = vld [vmem:[#allocation5 + $0x1b8] sm:$0xff]  ;;  %v823_v13 = vpack.c.bf16 %v110_v7, %v106_v5  ;;  %v112_v15 = vld [vmem:[#allocation5 + $0x180] sm:$0xff] }
  0x49   :  { %816 = vmatpush1.bf16.msra.mxu1 %v815_v52  ;;  %786 = vmatprep.subr.bf16.mxu0 %v785_v53  ;;  %v793_v14 = vpack.c.bf16 %v117_v9, %v113_v8  ;;  %v116_v16 = vld [vmem:[#allocation5 + $0x1a0] sm:$0xff]  ;;  %v114_v17 = vld [vmem:[#allocation5 + $0x190] sm:$0xff]  ;;  %v825_v18 = vpack.c.bf16 %v119_v11, %v115_v10  ;;  %v121_v20 = vld [vmem:[#allocation5 + $0x1c8] sm:$0xff] }
  0x4a   :  { %818 = vmatprep.subr.bf16.mxu1 %v817_v57  ;;  %v118_v19 = vld [vmem:[#allocation5 + $0x1b0] sm:$0xff]  ;;  %v125_v21 = vld [vmem:[#allocation5 + $0x1e8] sm:$0xff]  ;;  %v123_v22 = vld [vmem:[#allocation5 + $0x1d8] sm:$0xff]  ;;  %v795_v24 = vpack.c.bf16 %v116_v16, %v112_v15 }
  0x4b   :  { %v127_v23 = vld [vmem:[#allocation5 + $0x1f8] sm:$0xff]  ;;  %v827_v25 = vpack.c.bf16 %v118_v19, %v114_v17  ;;  %v797_v26 = vpack.c.bf16 %v125_v21, %v121_v20  ;;  %v120_v27 = vld [vmem:[#allocation5 + $0x1c0] sm:$0xff]  ;;  %v122_v30 = vld [vmem:[#allocation5 + $0x1d0] sm:$0xff] }
  0x4c   :  { %788 = vmatpush1.bf16.msra.mxu0 %v787_v63  ;;  %v124_v28 = vld [vmem:[#allocation5 + $0x1e0] sm:$0xff]  ;;  %v829_v29 = vpack.c.bf16 %v127_v23, %v123_v22  ;;  %v126_v31 = vld [vmem:[#allocation5 + $0x1f0] sm:$0xff]  ;;  %v1120_v35 = vld [vmem:[#allocation2 + $0x8] sm:$0xff] }
  0x4d   :  { %820 = vmatpush1.bf16.msra.mxu1 %v819_v1  ;;  %790 = vmatprep.subr.bf16.mxu0 %v789_v2  ;;  %v799_v32 = vpack.c.bf16 %v124_v28, %v120_v27  ;;  %v831_v33 = vpack.c.bf16 %v126_v31, %v122_v30  ;;  %v1115_v34 = vld [vmem:[#allocation2] sm:$0xff] }
  0x4e   :  { %822 = vmatprep.subr.bf16.mxu1 %v821_v6  ;;  %v128_v39 = vld [vmem:[%s1221_s2] sm:$0xf] }
  0x4f   :  { %v133_v43 = vrot.slane %v128_v39, %v132_v38  ;;  %v141_v44 = vrot.slane %v128_v39, %v140_v40  ;;  %v137_v45 = vrot.slane %v128_v39, %v136_v41  ;;  %v145_v46 = vrot.slane %v128_v39, %v144_v42  ;;  %v465_v38 = vld [vmem:[#allocation7 + $0x80] sm:$0xff]  ;;  %v466_v39 = vld [vmem:[#allocation7 + $0x88] sm:$0xff] }
  0x50   :  { %792 = vmatpush1.bf16.msra.mxu0 %v791_v12  ;;  %v833_v42 = vpack.c.bf16 %v466_v39, %v465_v38  ;;  %v504_v38 = vld [vmem:[#allocation7 + $0x1b8] sm:$0xff]  ;;  %v457_v39 = vld [vmem:[#allocation7 + $0x40] sm:$0xff] }
  0x51   :  { %824 = vmatpush1.bf16.msra.mxu1 %v823_v13  ;;  %794 = vmatprep.subr.bf16.mxu0 %v793_v14 }
  0x52   :  { %826 = vmatprep.subr.bf16.mxu1 %v825_v18 }
  0x54   :  { %796 = vmatpush1.bf16.msra.mxu0 %v795_v24 }
  0x55   :  { %828 = vmatpush1.bf16.msra.mxu1 %v827_v25  ;;  %798 = vmatprep.subr.bf16.mxu0 %v797_v26 }
  0x56   :  { %830 = vmatprep.subr.bf16.mxu1 %v829_v29 }
  0x58   :  { %800 = vmatpush1.bf16.msra.mxu0 %v799_v32 }
  0x59   :  { %832 = vmatpush1.bf16.msra.mxu1 %v831_v33  ;;  %834 = vmatprep.subr.bf16.mxu0 %v833_v42 }
  0x5b   :  { %215 = vmatmul.mubr.f32.vlgmr.msra.gmra.mrb[0].mxu0 %v1115_v34 }
  0x5c   :  { %292 = vmatmul.mubr.f32.vlgmr.msra.gmra.mrb[0].mxu1 %v1115_v34  ;;  %220 = vmatprep.mubr.f32.mxu0 %v1039_v0 }
  0x5d   :  { %297 = vmatprep.mubr.f32.mxu1 %v1039_v0 }
  0x5f   :  { %221 = vmatmul.mubr.f32.gmra.mrb[2].mxu0 %v1120_v35 }
  0x60   :  { %298 = vmatmul.mubr.f32.gmra.mrb[2].mxu1 %v1120_v35 }
 0x12e   :  { %v216_v47 = vpop.f32.mrb[0].mxu0 }
 0x12f   :  { %v217_v0 = vadd.f32 %v216_v47, %v133_v43  ;;  %v293_v48 = vpop.f32.mrb[0].mxu1  ;;  %v218_v49 = vpop.f32.mrb[1].mxu0 }
 0x130   :  { %v294_v50 = vadd.f32 %v293_v48, %v141_v44  ;;  %v219_v51 = vadd.f32 %v218_v49, %v137_v45  ;;  %v295_v52 = vpop.f32.mrb[1].mxu1  ;;  %v468_v48 = vld [vmem:[#allocation7 + $0x98] sm:$0xff]  ;;  %v497_v49 = vld [vmem:[#allocation7 + $0x180] sm:$0xff] }
 0x131   :  { %v304_v53 = vmul.f32 0.5, %v217_v0  ;;  %v296_v54 = vadd.f32 %v295_v52, %v145_v46 }
 0x132   :  { %v306_v55 = vmul.f32 0.5, %v294_v50  ;;  %v305_v56 = vmul.f32 0.5, %v219_v51  ;;  %v222_v57 = vpop.f32.mrb[2].mxu0 }
 0x133   :  { %906 = vtanh.f32 %v304_v53  ;;  %v307_v58 = vmul.f32 0.5, %v296_v54  ;;  %v223_v59 = vadd.f32 %v222_v57, %v133_v43  ;;  %v299_v60 = vpop.f32.mrb[2].mxu1  ;;  %v224_v61 = vpop.f32.mrb[3].mxu0  ;;  %v449_v43 = vld [vmem:[#allocation7] sm:$0xff]  ;;  %v498_v53 = vld [vmem:[#allocation7 + $0x188] sm:$0xff] }
 0x134   :  { %908 = vtanh.f32 %v306_v55  ;;  %v301_v62 = vpop.f32.mrb[3].mxu1  ;;  %v225_v1 = vadd.f32 %v224_v61, %v137_v45  ;;  %v1128_v3 = vadd.f32 %v299_v60, %v141_v44  ;;  %v450_v44 = vld [vmem:[#allocation7 + $0x8] sm:$0xff]  ;;  %v452_v55 = vld [vmem:[#allocation7 + $0x18] sm:$0xff]  ;;  %v865_v57 = vpack.c.bf16 %v498_v53, %v497_v49 }
 0x135   :  { %910 = vtanh.f32 %v305_v56  ;;  %v308_v63 = vmul.f32 0.5, %v223_v59  ;;  %v1130_v5 = vadd.f32 %v301_v62, %v145_v46  ;;  %v835_v47 = vpack.c.bf16 %v450_v44, %v449_v43  ;;  %v482_v60 = vld [vmem:[#allocation7 + $0x108] sm:$0xff]  ;;  %v469_v62 = vld [vmem:[#allocation7 + $0xa0] sm:$0xff]  ;;  %v487_v44 = vld [vmem:[#allocation7 + $0x130] sm:$0xff] }
 0x136   :  { %912 = vtanh.f32 %v307_v58  ;;  %v309_v2 = vmul.f32 0.5, %v225_v1  ;;  %v310_v8 = vmul.f32 0.5, %v1128_v3  ;;  %866 = vmatprep.subr.bf16.mxu1 %v865_v57  ;;  %v490_v57 = vld [vmem:[#allocation7 + $0x148] sm:$0xff] }
 0x137   :  { %914 = vtanh.f32 %v308_v63  ;;  %v311_v16 = vmul.f32 0.5, %v1130_v5  ;;  %836 = vmatpush3.bf16.msra.mxu0 %v835_v47  ;;  %v470_v63 = vld [vmem:[#allocation7 + $0xa8] sm:$0xff]  ;;  %v475_v47 = vld [vmem:[#allocation7 + $0xd0] sm:$0xff] }
 0x138   :  { %916 = vtanh.f32 %v309_v2 }
 0x139   :  { %918 = vtanh.f32 %v310_v8  ;;  %v454_v8 = vld [vmem:[#allocation7 + $0x28] sm:$0xff] }
 0x13a   :  { %920 = vtanh.f32 %v311_v16 }
 0x13d   :  { %v907_v4 = vpop.eup %906 }
 0x13e   :  { %v909_v6 = vpop.eup %908  ;;  %v320_v7 = vadd.f32 1.0, %v907_v4  ;;  %v841_v4 = vpack.c.bf16 %v470_v63, %v469_v62  ;;  %v508_v63 = vld [vmem:[#allocation7 + $0x1d8] sm:$0xff] }
 0x13f   :  { %v911_v9 = vpop.eup %910  ;;  %v322_v10 = vadd.f32 1.0, %v909_v6  ;;  %v500_v6 = vld [vmem:[#allocation7 + $0x198] sm:$0xff] }
 0x140   :  { %v913_v11 = vpop.eup %912  ;;  %v328_v12 = vmul.f32 0.5, %v320_v7  ;;  %v321_v13 = vadd.f32 1.0, %v911_v9  ;;  %v453_v7 = vld [vmem:[#allocation7 + $0x20] sm:$0xff] }
 0x141   :  { %v330_v14 = vmul.f32 0.5, %v322_v10  ;;  %v323_v15 = vadd.f32 1.0, %v913_v11  ;;  %v915_v19 = vpop.eup %914  ;;  %v843_v10 = vpack.c.bf16 %v454_v8, %v453_v7  ;;  %v483_v11 = vld [vmem:[#allocation7 + $0x110] sm:$0xff]  ;;  %v492_v8 = vld [vmem:[#allocation7 + $0x158] sm:$0xff] }
 0x142   :  { %v1134_v17 = vmul.f32 %v328_v12, %v217_v0  ;;  %v329_v18 = vmul.f32 0.5, %v321_v13  ;;  %v324_v23 = vadd.f32 1.0, %v915_v19  ;;  %v917_v24 = vpop.eup %916  ;;  %v467_v0 = vld [vmem:[#allocation7 + $0x90] sm:$0xff]  ;;  %v484_v12 = vld [vmem:[#allocation7 + $0x118] sm:$0xff]  ;;  %v502_v19 = vld [vmem:[#allocation7 + $0x1a8] sm:$0xff] }
 0x143   :  { %v1136_v20 = vmul.f32 %v330_v14, %v294_v50  ;;  %v331_v21 = vmul.f32 0.5, %v323_v15  ;;  %v325_v27 = vadd.f32 1.0, %v917_v24  ;;  %v919_v30 = vpop.eup %918  ;;  %v837_v52 = vpack.c.bf16 %v468_v48, %v467_v0  ;;  %v472_v14 = vld [vmem:[#allocation7 + $0xb8] sm:$0xff]  ;;  %v501_v15 = vld [vmem:[#allocation7 + $0x1a0] sm:$0xff]  ;;  %v491_v7 = vld [vmem:[#allocation7 + $0x150] sm:$0xff] }
 0x144   :  { %344 = vadd.xlane.f32.xlu0 %v1134_v17  ;;  %v1140_v22 = vmul.f32 %v329_v18, %v219_v51  ;;  %v332_v26 = vmul.f32 0.5, %v324_v23  ;;  %v351_v28 = vmul.f32 %v1134_v17, %v1134_v17  ;;  %v921_v33 = vpop.eup %920  ;;  %v326_v36 = vadd.f32 1.0, %v919_v30  ;;  %v456_v23 = vld [vmem:[#allocation7 + $0x38] sm:$0xff]  ;;  %v505_v48 = vld [vmem:[#allocation7 + $0x1c0] sm:$0xff] }
 0x145   :  { %397 = vadd.xlane.f32.xlu1 %v1136_v20  ;;  %v1142_v25 = vmul.f32 %v331_v21, %v296_v54  ;;  %v403_v29 = vmul.f32 %v1136_v20, %v1136_v20  ;;  %v333_v32 = vmul.f32 0.5, %v325_v27  ;;  %v327_v41 = vadd.f32 1.0, %v921_v33  ;;  %v451_v54 = vld [vmem:[#allocation7 + $0x10] sm:$0xff]  ;;  %838 = vmatprep.subr.bf16.mxu0 %v837_v52  ;;  %v474_v33 = vld [vmem:[#allocation7 + $0xc8] sm:$0xff]  ;;  %v476_v0 = vld [vmem:[#allocation7 + $0xd8] sm:$0xff] }
 0x146   :  { %v1150_v31 = vmul.f32 %v332_v26, %v223_v59  ;;  %v377_v37 = vmul.f32 %v1140_v22, %v1140_v22  ;;  %v334_v45 = vmul.f32 0.5, %v326_v36  ;;  %v839_v58 = vpack.c.bf16 %v452_v55, %v451_v54  ;;  %v481_v59 = vld [vmem:[#allocation7 + $0x100] sm:$0xff]  ;;  %v455_v21 = vld [vmem:[#allocation7 + $0x30] sm:$0xff]  ;;  %v460_v52 = vld [vmem:[#allocation7 + $0x58] sm:$0xff] }
 0x147   :  { %v1155_v40 = vmul.f32 %v333_v32, %v225_v1  ;;  %v429_v46 = vmul.f32 %v1142_v25, %v1142_v25  ;;  %v335_v50 = vmul.f32 0.5, %v327_v41  ;;  %v867_v61 = vpack.c.bf16 %v482_v60, %v481_v59  ;;  %v499_v1 = vld [vmem:[#allocation7 + $0x190] sm:$0xff]  ;;  %v473_v32 = vld [vmem:[#allocation7 + $0xc0] sm:$0xff]  ;;  %v458_v41 = vld [vmem:[#allocation7 + $0x48] sm:$0xff] }
 0x148   :  { %371 = vadd.xlane.f32.xlu0 %v1140_v22  ;;  %v352_v51 = vmul.f32 %v1150_v31, %v1150_v31  ;;  %v1163_v56 = vmul.f32 %v334_v45, %v1128_v3  ;;  %840 = vmatpush3.bf16.msra.mxu0 %v839_v58  ;;  %v869_v9 = vpack.c.bf16 %v500_v6, %v499_v1  ;;  %v503_v36 = vld [vmem:[#allocation7 + $0x1b0] sm:$0xff]  ;;  %v488_v45 = vld [vmem:[#allocation7 + $0x138] sm:$0xff]  ;;  %v489_v55 = vld [vmem:[#allocation7 + $0x140] sm:$0xff] }
 0x149   :  { %423 = vadd.xlane.f32.xlu1 %v1142_v25  ;;  %v1167_v2 = vmul.f32 %v335_v50, %v1130_v5  ;;  %v378_v3 = vmul.f32 %v1155_v40, %v1155_v40  ;;  %868 = vmatpush3.bf16.msra.mxu1 %v867_v61  ;;  %v871_v13 = vpack.c.bf16 %v484_v12, %v483_v11  ;;  %v471_v5 = vld [vmem:[#allocation7 + $0xb0] sm:$0xff]  ;;  %v506_v50 = vld [vmem:[#allocation7 + $0x1c8] sm:$0xff]  ;;  %v477_v59 = vld [vmem:[#allocation7 + $0xe0] sm:$0xff] }
 0x14a   :  { %842 = vmatprep.subr.bf16.mxu0 %v841_v4  ;;  %870 = vmatprep.subr.bf16.mxu1 %v869_v9  ;;  %v845_v18 = vpack.c.bf16 %v472_v14, %v471_v5  ;;  %v404_v24 = vmul.f32 %v1163_v56, %v1163_v56  ;;  %v873_v26 = vpack.c.bf16 %v502_v19, %v501_v15  ;;  %v478_v60 = vld [vmem:[#allocation7 + $0xe8] sm:$0xff]  ;;  %v507_v61 = vld [vmem:[#allocation7 + $0x1d0] sm:$0xff]  ;;  %v461_v1 = vld [vmem:[#allocation7 + $0x60] sm:$0xff] }
 0x14b   :  { %v430_v16 = vmul.f32 %v1167_v2, %v1167_v2  ;;  %v847_v27 = vpack.c.bf16 %v456_v23, %v455_v21  ;;  %v877_v42 = vpack.c.bf16 %v504_v38, %v503_v36  ;;  %v851_v43 = vpack.c.bf16 %v458_v41, %v457_v39  ;;  %v480_v11 = vld [vmem:[#allocation7 + $0xf8] sm:$0xff]  ;;  %v509_v12 = vld [vmem:[#allocation7 + $0x1e0] sm:$0xff]  ;;  %v510_v5 = vld [vmem:[#allocation7 + $0x1e8] sm:$0xff] }
 0x14c   :  { %353 = vadd.xlane.f32.xlu0 %v351_v28  ;;  %844 = vmatpush3.bf16.msra.mxu0 %v843_v10  ;;  %v485_v28 = vld [vmem:[#allocation7 + $0x120] sm:$0xff]  ;;  %v853_v49 = vpack.c.bf16 %v476_v0, %v475_v47  ;;  %v881_v53 = vpack.c.bf16 %v506_v50, %v505_v48  ;;  %v883_v58 = vpack.c.bf16 %v490_v57, %v489_v55  ;;  %v479_v10 = vld [vmem:[#allocation7 + $0xf0] sm:$0xff]  ;;  %v464_v15 = vld [vmem:[#allocation7 + $0x78] sm:$0xff] }
 0x14d   :  { %405 = vadd.xlane.f32.xlu1 %v403_v29  ;;  %872 = vmatpush3.bf16.msra.mxu1 %v871_v13  ;;  %v486_v29 = vld [vmem:[#allocation7 + $0x128] sm:$0xff]  ;;  %v857_v62 = vpack.c.bf16 %v478_v60, %v477_v59  ;;  %v885_v4 = vpack.c.bf16 %v508_v63, %v507_v61  ;;  %v887_v9 = vpack.c.bf16 %v492_v8, %v491_v7  ;;  %v463_v14 = vld [vmem:[#allocation7 + $0x70] sm:$0xff]  ;;  %v493_v19 = vld [vmem:[#allocation7 + $0x160] sm:$0xff] }
 0x14e   :  { %846 = vmatprep.subr.bf16.mxu0 %v845_v18  ;;  %v875_v30 = vpack.c.bf16 %v486_v29, %v485_v28  ;;  %874 = vmatprep.subr.bf16.mxu1 %v873_v26  ;;  %v861_v13 = vpack.c.bf16 %v480_v11, %v479_v10  ;;  %v863_v18 = vpack.c.bf16 %v464_v15, %v463_v14  ;;  %v494_v21 = vld [vmem:[#allocation7 + $0x168] sm:$0xff]  ;;  %v512_v26 = vld [vmem:[#allocation7 + $0x1f8] sm:$0xff]  ;;  %v495_v28 = vld [vmem:[#allocation7 + $0x170] sm:$0xff] }
 0x14f   :  { %v891_v23 = vpack.c.bf16 %v494_v21, %v493_v19  ;;  %v496_v29 = vld [vmem:[#allocation7 + $0x178] sm:$0xff] }
 0x150   :  { %346 = vadd.xlane.f32.xlu0 %v1150_v31  ;;  %848 = vmatpush3.bf16.msra.mxu0 %v847_v27 }
 0x151   :  { %379 = vadd.xlane.f32.xlu1 %v377_v37  ;;  %876 = vmatpush3.bf16.msra.mxu1 %v875_v30  ;;  %v849_v37 = vpack.c.bf16 %v474_v33, %v473_v32  ;;  %v895_v30 = vpack.c.bf16 %v496_v29, %v495_v28 }
 0x152   :  { %878 = vmatprep.subr.bf16.mxu1 %v877_v42 }
 0x153   :  { %850 = vmatprep.subr.bf16.mxu0 %v849_v37 }
 0x154   :  { %373 = vadd.xlane.f32.xlu0 %v1155_v40  ;;  %852 = vmatpush3.bf16.msra.mxu0 %v851_v43 }
 0x155   :  { %431 = vadd.xlane.f32.xlu1 %v429_v46  ;;  %v879_v46 = vpack.c.bf16 %v488_v45, %v487_v44  ;;  %854 = vmatprep.subr.bf16.mxu0 %v853_v49 }
 0x157   :  { %880 = vmatpush3.bf16.msra.mxu1 %v879_v46 }
 0x158   :  { %355 = vadd.xlane.f32.xlu0 %v352_v51  ;;  %v459_v51 = vld [vmem:[#allocation7 + $0x50] sm:$0xff]  ;;  %882 = vmatprep.subr.bf16.mxu1 %v881_v53 }
 0x159   :  { %399 = vadd.xlane.f32.xlu1 %v1163_v56  ;;  %v855_v54 = vpack.c.bf16 %v460_v52, %v459_v51 }
 0x15b   :  { %856 = vmatpush3.bf16.msra.mxu0 %v855_v54  ;;  %884 = vmatpush3.bf16.msra.mxu1 %v883_v58 }
 0x15c   :  { %381 = vadd.xlane.f32.xlu0 %v378_v3  ;;  %v462_v3 = vld [vmem:[#allocation7 + $0x68] sm:$0xff]  ;;  %858 = vmatprep.subr.bf16.mxu0 %v857_v62 }
 0x15d   :  { %425 = vadd.xlane.f32.xlu1 %v1167_v2  ;;  %v859_v6 = vpack.c.bf16 %v462_v3, %v461_v1  ;;  %886 = vmatprep.subr.bf16.mxu1 %v885_v4 }
 0x15f   :  { %860 = vmatpush3.bf16.msra.mxu0 %v859_v6  ;;  %888 = vmatpush3.bf16.msra.mxu1 %v887_v9 }
 0x160   :  { %433 = vadd.xlane.f32.xlu0 %v430_v16  ;;  %v889_v16 = vpack.c.bf16 %v510_v5, %v509_v12  ;;  %862 = vmatprep.subr.bf16.mxu0 %v861_v13 }
 0x161   :  { %407 = vadd.xlane.f32.xlu1 %v404_v24  ;;  %v511_v24 = vld [vmem:[#allocation7 + $0x1f0] sm:$0xff] }
 0x162   :  { %890 = vmatprep.subr.bf16.mxu1 %v889_v16  ;;  %v893_v27 = vpack.c.bf16 %v512_v26, %v511_v24 }
 0x163   :  { %864 = vmatpush3.bf16.msra.mxu0 %v863_v18  ;;  %892 = vmatpush3.bf16.msra.mxu1 %v891_v23 }
 0x164   :  { %894 = vmatprep.subr.bf16.mxu1 %v893_v27 }
 0x167   :  { %896 = vmatpush3.bf16.msra.mxu1 %v895_v30 }
 0x1d1   :  { %v345_v32 = vpop.xlane.xlu0 %344 }
 0x1d2   :  { %v398_v33 = vpop.xlane.xlu1 %397  ;;  %v1176_v37 = vmul.f32 0.0078125, %v345_v32 }
 0x1d3   :  { %v1178_v41 = vmul.f32 0.0078125, %v398_v33 }
 0x1d4   :  { %v359_v42 = vmul.f32 %v1176_v37, %v1176_v37  ;;  %v363_v30 = vsub.f32 %v1134_v17, %v1176_v37 }
 0x1d5   :  { %v372_v36 = vpop.xlane.xlu0 %371  ;;  %v411_v48 = vmul.f32 %v1178_v41, %v1178_v41 }
 0x1d6   :  { %v424_v38 = vpop.xlane.xlu1 %423  ;;  %v375_v45 = vmul.f32 0.0078125, %v372_v36 }
 0x1d7   :  { %v427_v50 = vmul.f32 0.0078125, %v424_v38 }
 0x1d8   :  { %v385_v51 = vmul.f32 %v375_v45, %v375_v45  ;;  %v389_v23 = vsub.f32 %v1140_v22, %v375_v45 }
 0x1d9   :  { %v354_v39 = vpop.xlane.xlu0 %353  ;;  %v437_v60 = vmul.f32 %v427_v50, %v427_v50 }
 0x1da   :  { %v406_v43 = vpop.xlane.xlu1 %405  ;;  %v357_v44 = vmul.f32 0.0078125, %v354_v39 }
 0x1db   :  { %v409_v46 = vmul.f32 0.0078125, %v406_v43 }
 0x1dc   :  { %v361_v47 = vsub.f32 %v357_v44, %v359_v42  ;;  %v441_v44 = vsub.f32 %v1142_v25, %v427_v50 }
 0x1dd   :  { %v347_v0 = vpop.xlane.xlu0 %346  ;;  %v413_v53 = vsub.f32 %v409_v46, %v411_v48  ;;  %v415_v46 = vsub.f32 %v1136_v20, %v1178_v41 }
 0x1de   :  { %v380_v49 = vpop.xlane.xlu1 %379  ;;  %v365_v54 = vadd.f32 1e-05, %v361_v47  ;;  %v1184_v58 = vmul.f32 0.0078125, %v347_v0 }
 0x1df   :  { %v383_v52 = vmul.f32 0.0078125, %v380_v49  ;;  %v417_v63 = vadd.f32 1e-05, %v413_v53 }
 0x1e0   :  { %922 = vrsqrt.f32 %v365_v54  ;;  %v360_v4 = vmul.f32 %v1184_v58, %v1184_v58  ;;  %v364_v25 = vsub.f32 %v1150_v31, %v1184_v58  ;;  %v692_v31 = vld [vmem:[%s1223_s4] ss:$0 sm:$0xff]  ;;  %s1004_s4 = scalar_lea.vmem %s680_s9, 256 }
 0x1e1   :  { %v387_v55 = vsub.f32 %v383_v52, %v385_v51  ;;  %v374_v57 = vpop.xlane.xlu0 %373  ;;  %p1005_p10 = scmp.ne.s32.totalorder %s680_s9, %s1004_s4  ;;  %p1010_p12 = scmp.lt.s32.totalorder %s1004_s4, %s1004_s4 }
 0x1e2   :  { %v432_v59 = vpop.xlane.xlu1 %431  ;;  %v376_v6 = vmul.f32 0.0078125, %v374_v57 }
 0x1e3   :  { %v391_v61 = vadd.f32 1e-05, %v387_v55  ;;  %v435_v62 = vmul.f32 0.0078125, %v432_v59  ;;  %p1011_p13 = por %p1010_p12, %p1009_p11 }
 0x1e4   :  { %v386_v12 = vmul.f32 %v376_v6, %v376_v6  ;;  %v390_v48 = vsub.f32 %v1155_v40, %v376_v6 }
 0x1e5   :  { %924 = vrsqrt.f32 %v391_v61  ;;  %v439_v1 = vsub.f32 %v435_v62, %v437_v60  ;;  %v356_v3 = vpop.xlane.xlu0 %355  ;;  %p1012_p0 = pnand %p1011_p13, %p1005_p10 }
 0x1e6   :  { %v400_v7 = vpop.xlane.xlu1 %399  ;;  %v358_v8 = vmul.f32 0.0078125, %v356_v3  ;;  %926 = vrsqrt.f32 %v417_v63 }
 0x1e7   :  { %v443_v9 = vadd.f32 1e-05, %v439_v1  ;;  %v402_v14 = vmul.f32 0.0078125, %v400_v7 }
 0x1e8   :  { %v362_v10 = vsub.f32 %v358_v8, %v360_v4 }
 0x1e9   :  { %928 = vrsqrt.f32 %v443_v9  ;;  %v382_v11 = vpop.xlane.xlu0 %381  ;;  %v412_v32 = vmul.f32 %v402_v14, %v402_v14  ;;  %v416_v41 = vsub.f32 %v1163_v56, %v402_v14 }
 0x1ea   :  { %v426_v13 = vpop.xlane.xlu1 %425  ;;  %v384_v5 = vmul.f32 0.0078125, %v382_v11  ;;  %v366_v15 = vadd.f32 1e-05, %v362_v10  ;;  %v923_v21 = vpop.eup %922 }
 0x1eb   :  { %v428_v16 = vmul.f32 0.0078125, %v426_v13  ;;  %v369_v42 = vmul.f32 %v923_v21, %v363_v30 }
 0x1ec   :  { %v388_v18 = vsub.f32 %v384_v5, %v386_v12  ;;  %930 = vrsqrt.f32 %v366_v15 }
 0x1ed   :  { %v434_v19 = vpop.xlane.xlu0 %433  ;;  %v438_v24 = vmul.f32 %v428_v16, %v428_v16  ;;  %v442_v52 = vsub.f32 %v1167_v2, %v428_v16 }
 0x1ee   :  { %v392_v26 = vadd.f32 1e-05, %v388_v18  ;;  %v408_v27 = vpop.xlane.xlu1 %407  ;;  %v436_v28 = vmul.f32 0.0078125, %v434_v19 }
 0x1ef   :  { %v925_v29 = vpop.eup %924  ;;  %v410_v33 = vmul.f32 0.0078125, %v408_v27 }
 0x1f0   :  { %932 = vrsqrt.f32 %v392_v26  ;;  %v440_v36 = vsub.f32 %v436_v28, %v438_v24  ;;  %v395_v38 = vmul.f32 %v925_v29, %v389_v23  ;;  %v927_v43 = vpop.eup %926 }
 0x1f1   :  { %v414_v39 = vsub.f32 %v410_v33, %v412_v32  ;;  %v421_v37 = vmul.f32 %v927_v43, %v415_v46 }
 0x1f2   :  { %v444_v22 = vadd.f32 1e-05, %v440_v36  ;;  %584 = vmatprep.mubr.f32.mxu0 %v395_v38 }
 0x1f3   :  { %v929_v45 = vpop.eup %928  ;;  %v418_v47 = vadd.f32 1e-05, %v414_v39  ;;  %585 = vmatmul.mubr.f32.vlgmr.msra.gmra.mrb[4].mxu0 %v369_v42 }
 0x1f4   :  { %934 = vrsqrt.f32 %v444_v22  ;;  %v447_v17 = vmul.f32 %v929_v45, %v441_v44 }
 0x1f5   :  { %936 = vrsqrt.f32 %v418_v47 }
 0x1f6   :  { %659 = vmatprep.mubr.f32.mxu1 %v447_v17  ;;  %v931_v0 = vpop.eup %930 }
 0x1f7   :  { %660 = vmatmul.mubr.f32.vlgmr.msra.gmra.mrb[4].mxu1 %v421_v37  ;;  %v370_v51 = vmul.f32 %v931_v0, %v364_v25 }
 0x1fa   :  { %v933_v49 = vpop.eup %932 }
 0x1fb   :  { %v396_v50 = vmul.f32 %v933_v49, %v390_v48 }
 0x1fd   :  { %589 = vmatprep.mubr.f32.mxu0 %v396_v50 }
 0x1fe   :  { %v935_v20 = vpop.eup %934  ;;  %590 = vmatmul.mubr.f32.gmra.mrb[6].mxu0 %v370_v51 }
 0x1ff   :  { %v937_v53 = vpop.eup %936  ;;  %v448_v54 = vmul.f32 %v935_v20, %v442_v52 }
 0x200   :  { %v422_v55 = vmul.f32 %v937_v53, %v416_v41 }
 0x201   :  { %664 = vmatprep.mubr.f32.mxu1 %v448_v54 }
 0x202   :  { %665 = vmatmul.mubr.f32.gmra.mrb[6].mxu1 %v422_v55 }
 0x2c6   :  { %v725_v57 = vpop.f32.mrb[4].mxu0 }
 0x2c7   :  { %v726_v40 = vpop.f32.mrb[5].mxu0 }
 0x2c8   :  { %v727_v59 = vadd.f32 %v726_v40, %v725_v57 }
 0x2ca   :  { %v763_v58 = vpop.f32.mrb[4].mxu1  ;;  %v587_v2 = vadd.f32 %v727_v59, %v692_v31 }
 0x2cb   :  { %v764_v60 = vpop.f32.mrb[5].mxu1 }
 0x2cc   :  { %v765_v61 = vadd.f32 %v764_v60, %v763_v58 }
 0x2ce   :  { %v662_v62 = vadd.f32 %v765_v61, %v587_v2 }
 0x2d0   :  { %v670_v56 = vadd.f32 %v662_v62, %v1115_v34 }
 0x2d1   :  { %v728_v63 = vpop.f32.mrb[6].mxu0 }
 0x2d2   :  { %672 = vst [vmem:[#allocation8] sm:$0xff] %v670_v56  ;;  %v729_v1 = vpop.f32.mrb[7].mxu0 }
 0x2d3   :  { %v730_v3 = vadd.f32 %v729_v1, %v728_v63 }
 0x2d5   :  { %v766_v4 = vpop.f32.mrb[6].mxu1  ;;  %v592_v7 = vadd.f32 %v730_v3, %v692_v31 }
 0x2d6   :  { %v767_v6 = vpop.f32.mrb[7].mxu1 }
 0x2d7   :  { %v768_v8 = vadd.f32 %v767_v6, %v766_v4 }
 0x2d9   :  { %v667_v9 = vadd.f32 %v768_v8, %v592_v7 }
 0x2db   :  { %v671_v10 = vadd.f32 %v667_v9, %v1120_v35 }
 0x2dd   :  { %673 = vst [vmem:[#allocation8 + $0x8] sm:$0xff] %v671_v10 }
 0x2de   :  { %1015 = shalt.err (!%p1012_p0)
}
 0x2df   :  { %s1016_s12 = scalar_lea.hbm %s1224_s5, 256 }
 0x2e0   :  { %p1017_p1 = scmp.ne.s32.totalorder %s1224_s5, %s1016_s12  ;;  %p1020_p2 = scmp.lt.u32.totalorder %s1016_s12, %s1224_s5 }
 0x2e2   :  { %p1022_p3 = pnand %p1020_p2, %p1017_p1 }
 0x2e4   :  { %1025 = shalt.err (!%p1022_p3)
}
 0x2e5   :  { %685 = dma.vmem_to_hbm [thread:$0]  %s680_s9, 256, %s1224_s5, [#allocation4], %s1036_s1, %s1036_s1, %s1037_s17  }
 0x2e6   :  { %1030 = dma.done.wait [#allocation4], 256  }
 0x2e7   :  { %1031 = vsyncadd [#allocation4], 4294967040 }
 0x2e8   :  { %689 = vsyncpa [#allocation3], 1 }
 0x2e9   :  { %690 = vsyncpa [#allocation6], 1 }
 0x2ea   :  { %691 = vsyncpa [#allocation4], 1 }

</bundles_post_ra>
